<compile_context>
chip_gen: v6e
topology: v6e:2x2x1
jax: 0.10.0
libtpu: 0.0.40
codegen_flags: <defaults>
</compile_context>

<pallas_src>
import functools

import jax
import jax.numpy as jnp
from jax import lax
from jax.experimental import pallas as pl
from jax.experimental.pallas import tpu as pltpu

EPS = 1e-5  # LayerNorm / BatchNorm eps (PyTorch defaults)


# ----------------------------- in-kernel helpers ------------------------------------
def _layer_norm(x, g, b):
    mu = jnp.mean(x, axis=-1, keepdims=True)
    var = jnp.mean((x - mu) ** 2, axis=-1, keepdims=True)
    return (x - mu) * jax.lax.rsqrt(var + EPS) * g + b


def _sigmoid(x):
    # stable logistic via the EUP tanh: sigmoid(x) = 0.5*(tanh(x/2)+1)
    return 0.5 * (jnp.tanh(0.5 * x) + 1.0)


def _swish(x):
    return x * _sigmoid(x)


def _softmax_last(x):
    m = jnp.max(x, axis=-1, keepdims=True)
    e = jnp.exp(x - m)
    return e / jnp.sum(e, axis=-1, keepdims=True)


# ----------------------------------- kernel -----------------------------------------
def conformer_rnn_kernel(
    x_ref, relt_ref, pvec_ref,
    ffw1_ref, ffw2_ref, wqkv_ref, wo_ref, pw1_ref, pw2_ref,
    wih_ref, whh_ref, fc_ref,
    out_ref,
    gx_ref,
    *, heads, dim_head,
):
    f32 = jnp.float32
    x = x_ref[...].astype(f32)                    # (B, T, D)
    B, T, D = x.shape
    rel_t = relt_ref[...].astype(f32)             # (T, d, T): rel_t[i,:,j] = table[i-j+M]
    pvec = pvec_ref[...]                          # (27, W) packed 1-D params

    ffh = ffw1_ref.shape[2]                       # feed-forward hidden
    ci = pw2_ref.shape[0]                         # conv-module inner channels
    hid = whh_ref.shape[0]                        # LSTM hidden
    nl = fc_ref.shape[1]                          # num labels
    inner = wo_ref.shape[0]                       # heads * dim_head

    # ---- packed 1-D parameters (row layout must match the wrapper) ----
    ln1_g, ln1_b = pvec[0, :D], pvec[1, :D]
    ff1_b1, ff1_b2 = pvec[2, :ffh], pvec[3, :D]
    lna_g, lna_b = pvec[4, :D], pvec[5, :D]
    bo = pvec[6, :D]
    lnc_g, lnc_b = pvec[7, :D], pvec[8, :D]
    pw1_b = pvec[9, :2 * ci]
    dw0, dw1, dw2, dw_b = pvec[10, :ci], pvec[11, :ci], pvec[12, :ci], pvec[13, :ci]
    bn_scale, bn_shift = pvec[14, :ci], pvec[15, :ci]
    pw2_b = pvec[16, :D]
    ln2_g, ln2_b = pvec[17, :D], pvec[18, :D]
    ff2_b1, ff2_b2 = pvec[19, :ffh], pvec[20, :D]
    pn_g, pn_b = pvec[21, :D], pvec[22, :D]
    lstm_b = pvec[23, :4 * hid]                   # b_ih + b_hh, gate order [i,f,g,o]
    gate_scale = pvec[24, :4 * hid]               # 0.5 for i,f,o lanes; 1.0 for g lanes
    gate_shift = pvec[25, :4 * hid]               # 0.5 for i,f,o lanes; 0.0 for g lanes
    fc_b = pvec[26, :nl]

    def ff_block(xx, g_ln, b_ln, w1, b1, w2, b2):
        # x + 0.5 * FF(LN(x))
        h = _layer_norm(xx, g_ln, b_ln).reshape(B * T, D)
        h = jnp.dot(h, w1, preferred_element_type=f32) + b1
        h = _swish(h)
        h = jnp.dot(h, w2, preferred_element_type=f32) + b2
        return xx + 0.5 * h.reshape(B, T, D)

    # ---------------- ff1 ----------------
    x = ff_block(x, ln1_g, ln1_b, ffw1_ref[0], ff1_b1, ffw2_ref[0], ff1_b2)

    # ---------------- attention: x = x + Attn(LN(x)) ----------------
    a_in = _layer_norm(x, lna_g, lna_b).reshape(B * T, D)
    # ONE fused QKV matmul; softmax scale pre-folded into the q columns.
    qkv = jnp.dot(a_in, wqkv_ref[...], preferred_element_type=f32)   # (BT, 3*inner)
    q2 = qkv[:, :inner]
    k2 = qkv[:, inner:2 * inner]
    v2 = qkv[:, 2 * inner:]

    def split_heads(m):                           # (BT, H*d) -> (H*B, T, d)
        return jnp.concatenate(
            [m[:, h * dim_head:(h + 1) * dim_head].reshape(B, T, dim_head)
             for h in range(heads)], axis=0)

    qz, kz, vz = split_heads(q2), split_heads(k2), split_heads(v2)
    dots = jnp.einsum('zid,zjd->zij', qz, kz, preferred_element_type=f32)   # (Z,T,T)

    # Shaw rel-pos on the MXU: batch over the query index i (leading-batch matmul).
    q_t = pltpu.einshape('ztd->tzd', qz)                                   # (T, Z, d)
    pos_t = jnp.einsum('tzd,tdj->tzj', q_t, rel_t, preferred_element_type=f32)
    pos = pltpu.einshape('tzj->ztj', pos_t)                                # (Z, T, T)

    attn = _softmax_last(dots + pos)              # scale already folded into q
    ctx = jnp.einsum('zij,zjd->zid', attn, vz, preferred_element_type=f32)
    ctx = jnp.concatenate(
        [ctx[h * B:(h + 1) * B].reshape(B * T, dim_head) for h in range(heads)],
        axis=-1)                                  # (BT, H*d), head-major lanes
    ao = jnp.dot(ctx, wo_ref[...], preferred_element_type=f32) + bo
    x = x + ao.reshape(B, T, D)

    # ---------------- conv module: x = x + ConvModule(x) ----------------
    c_in = _layer_norm(x, lnc_g, lnc_b).reshape(B * T, D)
    cg = jnp.dot(c_in, pw1_ref[...], preferred_element_type=f32) + pw1_b   # (BT, 2ci)
    gate = (cg[:, :ci] * _sigmoid(cg[:, ci:])).reshape(B, T, ci)           # GLU
    # depthwise conv1d, kernel 3, "same": XLU rolls + iota edge masks (no pad-concat)
    t_idx = lax.broadcasted_iota(jnp.int32, (B, T, ci), 1)
    prev = jnp.where(t_idx == 0, 0.0, pltpu.roll(gate, shift=1, axis=1))       # gate[t-1]
    nxt = jnp.where(t_idx == T - 1, 0.0, pltpu.roll(gate, shift=T - 1, axis=1))  # gate[t+1]
    y = prev * dw0 + gate * dw1 + nxt * dw2 + dw_b
    y = y * bn_scale + bn_shift                                # BatchNorm1d (eval, folded)
    y = _swish(y)
    y = jnp.dot(y.reshape(B * T, ci), pw2_ref[...], preferred_element_type=f32) + pw2_b
    x = x + y.reshape(B, T, D)

    # ---------------- ff2 + post-norm ----------------
    x = ff_block(x, ln2_g, ln2_b, ffw1_ref[1], ff2_b1, ffw2_ref[1], ff2_b2)
    x = _layer_norm(x, pn_g, pn_b)                # (B, T, D)

    # ---------------- LSTM (PyTorch gate order [i, f, g, o]) ----------------
    # Input projection hoisted out of the recurrence: ONE (TB,D)@(D,4*hid) matmul,
    # stored time-major so the per-step read is a cheap leading-axis ref index.
    x_tm = pltpu.einshape('btd->tbd', x)                        # (T, B, D)
    gx = jnp.dot(x_tm.reshape(T * B, D), wih_ref[...],
                 preferred_element_type=f32) + lstm_b           # (TB, 4*hid)
    gx_ref[...] = gx.reshape(T, B, 4 * hid)

    whh = whh_ref[...]                                          # (hid, 4*hid), hoisted

    def lstm_step(t, carry):
        h, c, s = carry
        # h @ W_hh as `hid` VPU broadcast-FMAs (tiny hid: no MXU push on serial path)
        rec = h[:, 0:1] * whh[0, :]
        for j in range(1, hid):
            rec = rec + h[:, j:j + 1] * whh[j, :]
        pre = gx_ref[t] + rec                                   # (B, 4*hid)
        # ONE EUP tanh for all four gates: sigmoid(x)=0.5*tanh(0.5x)+0.5, tanh(x)=tanh(x)
        gates = jnp.tanh(pre * gate_scale) * gate_scale + gate_shift
        i_g = gates[:, 0:hid]
        f_g = gates[:, hid:2 * hid]
        g_g = gates[:, 2 * hid:3 * hid]
        o_g = gates[:, 3 * hid:4 * hid]
        c_n = f_g * c + i_g * g_g
        h_n = o_g * jnp.tanh(c_n)
        return (h_n, c_n, s + h_n)

    zeros_bh = jnp.zeros((B, hid), f32)
    _, _, h_sum = lax.fori_loop(0, T, lstm_step, (zeros_bh, zeros_bh, zeros_bh))

    pooled = h_sum * (1.0 / T)                    # out.mean(1); dropout = identity (eval)
    logits = jnp.dot(pooled, fc_ref[...], preferred_element_type=f32) + fc_b
    out_ref[...] = logits.astype(out_ref.dtype)


# ----------------------------------- params ----------------------------------------
def init_params(key, *, dim=16, dim_head=4, heads=4, ff_hidden=4, conv_inner=4,
                hid_dim=4, num_labels=2, max_pos_emb=512):
    """Deterministic parameter init mirroring the PyTorch module shapes/defaults."""
    keys = iter(jax.random.split(key, 64))

    def lin(shape, fan_in):
        k = 1.0 / jnp.sqrt(float(fan_in))
        return jax.random.uniform(next(keys), shape, jnp.float32, -k, k)

    inner_attn = heads * dim_head
    p = {}
    # ff1 (Scale(0.5, PreNorm(LN, Linear->Swish->Linear)))
    p['ln1_g'] = jnp.ones((dim,), jnp.float32); p['ln1_b'] = jnp.zeros((dim,), jnp.float32)
    p['ff1_w1'] = lin((ff_hidden, dim), dim);   p['ff1_b1'] = lin((ff_hidden,), dim)
    p['ff1_w2'] = lin((dim, ff_hidden), ff_hidden); p['ff1_b2'] = lin((dim,), ff_hidden)
    # attention (PreNorm)
    p['lna_g'] = jnp.ones((dim,), jnp.float32); p['lna_b'] = jnp.zeros((dim,), jnp.float32)
    p['wq'] = lin((inner_attn, dim), dim)
    p['wkv'] = lin((2 * inner_attn, dim), dim)
    p['wo'] = lin((dim, inner_attn), inner_attn); p['bo'] = lin((dim,), inner_attn)
    p['rel_table'] = jax.random.normal(next(keys), (2 * max_pos_emb + 1, dim_head), jnp.float32)
    # conv module
    p['lnc_g'] = jnp.ones((dim,), jnp.float32); p['lnc_b'] = jnp.zeros((dim,), jnp.float32)
    p['pw1_w'] = lin((2 * conv_inner, dim), dim); p['pw1_b'] = lin((2 * conv_inner,), dim)
    p['dw_w'] = lin((conv_inner, 3), 3);          p['dw_b'] = lin((conv_inner,), 3)
    p['bn_g'] = jnp.ones((conv_inner,), jnp.float32); p['bn_b'] = jnp.zeros((conv_inner,), jnp.float32)
    p['bn_m'] = jnp.zeros((conv_inner,), jnp.float32); p['bn_v'] = jnp.ones((conv_inner,), jnp.float32)
    p['pw2_w'] = lin((dim, conv_inner), conv_inner); p['pw2_b'] = lin((dim,), conv_inner)
    # ff2
    p['ln2_g'] = jnp.ones((dim,), jnp.float32); p['ln2_b'] = jnp.zeros((dim,), jnp.float32)
    p['ff2_w1'] = lin((ff_hidden, dim), dim);   p['ff2_b1'] = lin((ff_hidden,), dim)
    p['ff2_w2'] = lin((dim, ff_hidden), ff_hidden); p['ff2_b2'] = lin((dim,), ff_hidden)
    # post norm
    p['pn_g'] = jnp.ones((dim,), jnp.float32); p['pn_b'] = jnp.zeros((dim,), jnp.float32)
    # LSTM
    k = 1.0 / jnp.sqrt(float(hid_dim))
    p['w_ih'] = jax.random.uniform(next(keys), (4 * hid_dim, dim), jnp.float32, -k, k)
    p['w_hh'] = jax.random.uniform(next(keys), (4 * hid_dim, hid_dim), jnp.float32, -k, k)
    p['b_ih'] = jax.random.uniform(next(keys), (4 * hid_dim,), jnp.float32, -k, k)
    p['b_hh'] = jax.random.uniform(next(keys), (4 * hid_dim,), jnp.float32, -k, k)
    # fc
    p['fc_w'] = lin((num_labels, hid_dim), hid_dim); p['fc_b'] = lin((num_labels,), hid_dim)
    return p


# ----------------------------------- wrapper ----------------------------------------
def context_conformer_rnn_forward(src, params, *, heads=4, dim_head=4, hid_dim=4,
                                  num_labels=2, max_pos_emb=512):
    B, T, D = src.shape
    f32 = jnp.float32
    inner = heads * dim_head
    ci = params['pw2_w'].shape[1]
    ffh = params['ff1_w1'].shape[0]

    # Shaw relative-position table gather (trace-time glue, outside the kernel),
    # laid out (T, d, T) so the in-kernel pos matmul has a leading batch axis.
    # TODO(synk): at production T pass only the (2T-1, d) Toeplitz window + in-kernel
    # skew (or flash-style KV tiling) instead of this O(T^2 d) table.
    seq = jnp.arange(T)
    dist = jnp.clip(seq[:, None] - seq[None, :], -max_pos_emb, max_pos_emb) + max_pos_emb
    rel_t = jnp.transpose(params['rel_table'][dist], (0, 2, 1))   # (T, d, T)

    # --- trace-time (free) constant folding + weight pre-transposition ---
    scale = dim_head ** -0.5
    bn_scale = params['bn_g'] * jax.lax.rsqrt(params['bn_v'] + EPS)
    bn_shift = params['bn_b'] - params['bn_m'] * bn_scale
    lstm_bias = params['b_ih'] + params['b_hh']
    gate_scale = jnp.concatenate([jnp.full((hid_dim,), 0.5, f32),
                                  jnp.full((hid_dim,), 0.5, f32),
                                  jnp.ones((hid_dim,), f32),
                                  jnp.full((hid_dim,), 0.5, f32)])
    gate_shift = jnp.concatenate([jnp.full((hid_dim,), 0.5, f32),
                                  jnp.full((hid_dim,), 0.5, f32),
                                  jnp.zeros((hid_dim,), f32),
                                  jnp.full((hid_dim,), 0.5, f32)])

    # fused QKV weight (softmax scale folded into the q columns)
    wqkv = jnp.concatenate([params['wq'].T * scale,
                            params['wkv'][:inner].T,
                            params['wkv'][inner:].T], axis=1)    # (D, 3*inner)
    wo_t = params['wo'].T                                        # (inner, D)
    ffw1 = jnp.stack([params['ff1_w1'].T, params['ff2_w1'].T], axis=0)   # (2, D, ffh)
    ffw2 = jnp.stack([params['ff1_w2'].T, params['ff2_w2'].T], axis=0)   # (2, ffh, D)
    pw1_t = params['pw1_w'].T                                    # (D, 2*ci) fused GLU
    pw2_t = params['pw2_w'].T                                    # (ci, D)
    wih_t = params['w_ih'].T                                     # (D, 4*hid) fused gates
    whh_t = params['w_hh'].T                                     # (hid, 4*hid)
    fc_t = params['fc_w'].T                                      # (hid, num_labels)

    # --- pack every tiny 1-D parameter into ONE 2-D array (single DMA) ---
    rows = [
        params['ln1_g'], params['ln1_b'], params['ff1_b1'], params['ff1_b2'],
        params['lna_g'], params['lna_b'], params['bo'],
        params['lnc_g'], params['lnc_b'],
        params['pw1_b'],
        params['dw_w'][:, 0], params['dw_w'][:, 1], params['dw_w'][:, 2], params['dw_b'],
        bn_scale, bn_shift, params['pw2_b'],
        params['ln2_g'], params['ln2_b'], params['ff2_b1'], params['ff2_b2'],
        params['pn_g'], params['pn_b'],
        lstm_bias, gate_scale, gate_shift,
        params['fc_b'],
    ]
    width = max(int(r.shape[0]) for r in rows)
    pvec = jnp.stack([jnp.pad(r.astype(f32), (0, width - int(r.shape[0]))) for r in rows])

    ordered = [src, rel_t, pvec, ffw1, ffw2, wqkv, wo_t, pw1_t, pw2_t, wih_t, whh_t, fc_t]

    # advisory cost hint for XLA scheduling around the custom call
    flops = (2 * B * T * (4 * D * ffh + 3 * D * inner + inner * D
                          + 2 * D * ci + ci * D + 4 * D * hid_dim)
             + 2 * heads * B * T * T * 3 * dim_head
             + 2 * T * B * hid_dim * 4 * hid_dim
             + 2 * B * hid_dim * num_labels)
    transcendentals = (B * T * (2 * ffh + 3 * ci) + heads * B * T * T
                       + 2 * T * B * 4 * hid_dim)
    bytes_accessed = sum(int(a.size) * 4 for a in ordered) + B * num_labels * 4

    vmem = pl.BlockSpec(memory_space=pltpu.MemorySpace.VMEM)
    return pl.pallas_call(
        functools.partial(conformer_rnn_kernel, heads=heads, dim_head=dim_head),
        out_shape=jax.ShapeDtypeStruct((B, num_labels), jnp.float32),
        in_specs=[vmem] * len(ordered),
        out_specs=vmem,
        scratch_shapes=[pltpu.VMEM((T, B, 4 * hid_dim), jnp.float32)],   # time-major gx
        compiler_params=pltpu.CompilerParams(vmem_limit_bytes=32 * 1024 * 1024),
        cost_estimate=pl.CostEstimate(flops=flops, transcendentals=transcendentals,
                                      bytes_accessed=bytes_accessed),
    )(*ordered)


if __name__ == "__main__":
    key = jax.random.PRNGKey(0)
    k_param, k_src = jax.random.split(key)

    B, T, D = 2, 8, 16          # batch, sequence length, input_dim
    params = init_params(k_param, dim=D, dim_head=4, heads=4, ff_hidden=4,
                         conv_inner=4, hid_dim=4, num_labels=2)
    src = jax.random.normal(k_src, (B, T, D), jnp.float32)

    out = context_conformer_rnn_forward(src, params)
    out = jax.block_until_ready(out)
    assert out.shape == (B, 2)
    print("KERNEL_OK")
</pallas_src>

<mosaic_0001>
module attributes {stable_mosaic.version = 11 : i64} {
  func.func @conformer_rnn_kernel(%arg0: memref<2x8x16xf32, #tpu.memory_space<vmem>>, %arg1: memref<8x4x8xf32, #tpu.memory_space<vmem>>, %arg2: memref<27x16xf32, #tpu.memory_space<vmem>>, %arg3: memref<2x16x4xf32, #tpu.memory_space<vmem>>, %arg4: memref<2x4x16xf32, #tpu.memory_space<vmem>>, %arg5: memref<16x48xf32, #tpu.memory_space<vmem>>, %arg6: memref<16x16xf32, #tpu.memory_space<vmem>>, %arg7: memref<16x8xf32, #tpu.memory_space<vmem>>, %arg8: memref<4x16xf32, #tpu.memory_space<vmem>>, %arg9: memref<16x16xf32, #tpu.memory_space<vmem>>, %arg10: memref<4x16xf32, #tpu.memory_space<vmem>>, %arg11: memref<4x2xf32, #tpu.memory_space<vmem>>, %arg12: memref<2x2xf32, #tpu.memory_space<vmem>>, %arg13: memref<8x2x16xf32, #tpu.memory_space<vmem>>) attributes {dimension_semantics = [], scalar_prefetch = 0 : i64, scratch_operands = 1 : i64, tpu.core_type = #tpu.core_type<tc>} {
    %c0 = arith.constant 0 : index
    %c0_0 = arith.constant 0 : index
    %c0_1 = arith.constant 0 : index
    %0 = vector.load %arg0[%c0, %c0_0, %c0_1] : memref<2x8x16xf32, #tpu.memory_space<vmem>>, vector<2x8x16xf32>
    %c0_2 = arith.constant 0 : index
    %c0_3 = arith.constant 0 : index
    %c0_4 = arith.constant 0 : index
    %1 = vector.load %arg1[%c0_2, %c0_3, %c0_4] : memref<8x4x8xf32, #tpu.memory_space<vmem>>, vector<8x4x8xf32>
    %c0_5 = arith.constant 0 : index
    %c0_6 = arith.constant 0 : index
    %2 = vector.load %arg2[%c0_5, %c0_6] : memref<27x16xf32, #tpu.memory_space<vmem>>, vector<27x16xf32>
    %3 = vector.extract_strided_slice %2 {offsets = [0, 0], sizes = [1, 16], strides = [1, 1]} : vector<27x16xf32> to vector<1x16xf32>
    %4 = vector.shape_cast %3 : vector<1x16xf32> to vector<16xf32>
    %5 = vector.extract_strided_slice %2 {offsets = [1, 0], sizes = [1, 16], strides = [1, 1]} : vector<27x16xf32> to vector<1x16xf32>
    %6 = vector.shape_cast %5 : vector<1x16xf32> to vector<16xf32>
    %7 = vector.extract_strided_slice %2 {offsets = [2, 0], sizes = [1, 4], strides = [1, 1]} : vector<27x16xf32> to vector<1x4xf32>
    %8 = vector.shape_cast %7 : vector<1x4xf32> to vector<4xf32>
    %9 = vector.extract_strided_slice %2 {offsets = [3, 0], sizes = [1, 16], strides = [1, 1]} : vector<27x16xf32> to vector<1x16xf32>
    %10 = vector.shape_cast %9 : vector<1x16xf32> to vector<16xf32>
    %11 = vector.extract_strided_slice %2 {offsets = [4, 0], sizes = [1, 16], strides = [1, 1]} : vector<27x16xf32> to vector<1x16xf32>
    %12 = vector.shape_cast %11 : vector<1x16xf32> to vector<16xf32>
    %13 = vector.extract_strided_slice %2 {offsets = [5, 0], sizes = [1, 16], strides = [1, 1]} : vector<27x16xf32> to vector<1x16xf32>
    %14 = vector.shape_cast %13 : vector<1x16xf32> to vector<16xf32>
    %15 = vector.extract_strided_slice %2 {offsets = [6, 0], sizes = [1, 16], strides = [1, 1]} : vector<27x16xf32> to vector<1x16xf32>
    %16 = vector.shape_cast %15 : vector<1x16xf32> to vector<16xf32>
    %17 = vector.extract_strided_slice %2 {offsets = [7, 0], sizes = [1, 16], strides = [1, 1]} : vector<27x16xf32> to vector<1x16xf32>
    %18 = vector.shape_cast %17 : vector<1x16xf32> to vector<16xf32>
    %19 = vector.extract_strided_slice %2 {offsets = [8, 0], sizes = [1, 16], strides = [1, 1]} : vector<27x16xf32> to vector<1x16xf32>
    %20 = vector.shape_cast %19 : vector<1x16xf32> to vector<16xf32>
    %21 = vector.extract_strided_slice %2 {offsets = [9, 0], sizes = [1, 8], strides = [1, 1]} : vector<27x16xf32> to vector<1x8xf32>
    %22 = vector.shape_cast %21 : vector<1x8xf32> to vector<8xf32>
    %23 = vector.extract_strided_slice %2 {offsets = [10, 0], sizes = [1, 4], strides = [1, 1]} : vector<27x16xf32> to vector<1x4xf32>
    %24 = vector.shape_cast %23 : vector<1x4xf32> to vector<4xf32>
    %25 = vector.extract_strided_slice %2 {offsets = [11, 0], sizes = [1, 4], strides = [1, 1]} : vector<27x16xf32> to vector<1x4xf32>
    %26 = vector.shape_cast %25 : vector<1x4xf32> to vector<4xf32>
    %27 = vector.extract_strided_slice %2 {offsets = [12, 0], sizes = [1, 4], strides = [1, 1]} : vector<27x16xf32> to vector<1x4xf32>
    %28 = vector.shape_cast %27 : vector<1x4xf32> to vector<4xf32>
    %29 = vector.extract_strided_slice %2 {offsets = [13, 0], sizes = [1, 4], strides = [1, 1]} : vector<27x16xf32> to vector<1x4xf32>
    %30 = vector.shape_cast %29 : vector<1x4xf32> to vector<4xf32>
    %31 = vector.extract_strided_slice %2 {offsets = [14, 0], sizes = [1, 4], strides = [1, 1]} : vector<27x16xf32> to vector<1x4xf32>
    %32 = vector.shape_cast %31 : vector<1x4xf32> to vector<4xf32>
    %33 = vector.extract_strided_slice %2 {offsets = [15, 0], sizes = [1, 4], strides = [1, 1]} : vector<27x16xf32> to vector<1x4xf32>
    %34 = vector.shape_cast %33 : vector<1x4xf32> to vector<4xf32>
    %35 = vector.extract_strided_slice %2 {offsets = [16, 0], sizes = [1, 16], strides = [1, 1]} : vector<27x16xf32> to vector<1x16xf32>
    %36 = vector.shape_cast %35 : vector<1x16xf32> to vector<16xf32>
    %37 = vector.extract_strided_slice %2 {offsets = [17, 0], sizes = [1, 16], strides = [1, 1]} : vector<27x16xf32> to vector<1x16xf32>
    %38 = vector.shape_cast %37 : vector<1x16xf32> to vector<16xf32>
    %39 = vector.extract_strided_slice %2 {offsets = [18, 0], sizes = [1, 16], strides = [1, 1]} : vector<27x16xf32> to vector<1x16xf32>
    %40 = vector.shape_cast %39 : vector<1x16xf32> to vector<16xf32>
    %41 = vector.extract_strided_slice %2 {offsets = [19, 0], sizes = [1, 4], strides = [1, 1]} : vector<27x16xf32> to vector<1x4xf32>
    %42 = vector.shape_cast %41 : vector<1x4xf32> to vector<4xf32>
    %43 = vector.extract_strided_slice %2 {offsets = [20, 0], sizes = [1, 16], strides = [1, 1]} : vector<27x16xf32> to vector<1x16xf32>
    %44 = vector.shape_cast %43 : vector<1x16xf32> to vector<16xf32>
    %45 = vector.extract_strided_slice %2 {offsets = [21, 0], sizes = [1, 16], strides = [1, 1]} : vector<27x16xf32> to vector<1x16xf32>
    %46 = vector.shape_cast %45 : vector<1x16xf32> to vector<16xf32>
    %47 = vector.extract_strided_slice %2 {offsets = [22, 0], sizes = [1, 16], strides = [1, 1]} : vector<27x16xf32> to vector<1x16xf32>
    %48 = vector.shape_cast %47 : vector<1x16xf32> to vector<16xf32>
    %49 = vector.extract_strided_slice %2 {offsets = [23, 0], sizes = [1, 16], strides = [1, 1]} : vector<27x16xf32> to vector<1x16xf32>
    %50 = vector.shape_cast %49 : vector<1x16xf32> to vector<16xf32>
    %51 = vector.extract_strided_slice %2 {offsets = [24, 0], sizes = [1, 16], strides = [1, 1]} : vector<27x16xf32> to vector<1x16xf32>
    %52 = vector.shape_cast %51 : vector<1x16xf32> to vector<16xf32>
    %53 = vector.extract_strided_slice %2 {offsets = [25, 0], sizes = [1, 16], strides = [1, 1]} : vector<27x16xf32> to vector<1x16xf32>
    %54 = vector.shape_cast %53 : vector<1x16xf32> to vector<16xf32>
    %55 = vector.extract_strided_slice %2 {offsets = [26, 0], sizes = [1, 2], strides = [1, 1]} : vector<27x16xf32> to vector<1x2xf32>
    %56 = vector.shape_cast %55 : vector<1x2xf32> to vector<2xf32>
    %c0_7 = arith.constant 0 : index
    %c0_8 = arith.constant 0 : index
    %c0_9 = arith.constant 0 : index
    %57 = vector.load %arg3[%c0_7, %c0_8, %c0_9] : memref<2x16x4xf32, #tpu.memory_space<vmem>>, vector<1x16x4xf32>
    %58 = vector.shape_cast %57 : vector<1x16x4xf32> to vector<16x4xf32>
    %c0_10 = arith.constant 0 : index
    %c0_11 = arith.constant 0 : index
    %c0_12 = arith.constant 0 : index
    %59 = vector.load %arg4[%c0_10, %c0_11, %c0_12] : memref<2x4x16xf32, #tpu.memory_space<vmem>>, vector<1x4x16xf32>
    %60 = vector.shape_cast %59 : vector<1x4x16xf32> to vector<4x16xf32>
    %cst = arith.constant dense<0.000000e+00> : vector<2x8xf32>
    %61 = vector.multi_reduction <add>, %0, %cst [2] : vector<2x8x16xf32> to vector<2x8xf32>
    %62 = vector.shape_cast %61 : vector<2x8xf32> to vector<2x8x1xf32>
    %cst_13 = arith.constant 1.600000e+01 : f32
    %63 = vector.broadcast %cst_13 : f32 to vector<2x8x1xf32>
    %64 = arith.divf %62, %63 : vector<2x8x1xf32>
    %65 = vector.broadcast %64 : vector<2x8x1xf32> to vector<2x8x16xf32>
    %66 = arith.subf %0, %65 : vector<2x8x16xf32>
    %67 = arith.mulf %66, %66 : vector<2x8x16xf32>
    %cst_14 = arith.constant dense<0.000000e+00> : vector<2x8xf32>
    %68 = vector.multi_reduction <add>, %67, %cst_14 [2] : vector<2x8x16xf32> to vector<2x8xf32>
    %69 = vector.shape_cast %68 : vector<2x8xf32> to vector<2x8x1xf32>
    %cst_15 = arith.constant 1.600000e+01 : f32
    %70 = vector.broadcast %cst_15 : f32 to vector<2x8x1xf32>
    %71 = arith.divf %69, %70 : vector<2x8x1xf32>
    %72 = vector.broadcast %64 : vector<2x8x1xf32> to vector<2x8x16xf32>
    %73 = arith.subf %0, %72 : vector<2x8x16xf32>
    %cst_16 = arith.constant 9.99999974E-6 : f32
    %74 = vector.broadcast %cst_16 : f32 to vector<2x8x1xf32>
    %75 = arith.addf %71, %74 : vector<2x8x1xf32>
    %76 = math.rsqrt %75 : vector<2x8x1xf32>
    %77 = vector.broadcast %76 : vector<2x8x1xf32> to vector<2x8x16xf32>
    %78 = arith.mulf %73, %77 : vector<2x8x16xf32>
    %79 = vector.shape_cast %4 : vector<16xf32> to vector<1x1x16xf32>
    %80 = vector.broadcast %79 : vector<1x1x16xf32> to vector<2x8x16xf32>
    %81 = arith.mulf %78, %80 : vector<2x8x16xf32>
    %82 = vector.shape_cast %6 : vector<16xf32> to vector<1x1x16xf32>
    %83 = vector.broadcast %82 : vector<1x1x16xf32> to vector<2x8x16xf32>
    %84 = arith.addf %81, %83 : vector<2x8x16xf32>
    %85 = vector.shape_cast %84 : vector<2x8x16xf32> to vector<16x16xf32>
    %cst_17 = arith.constant dense<0.000000e+00> : vector<16x4xf32>
    %86 = tpu.matmul %85, %58, %cst_17 {dimension_numbers = #tpu.dot_dimension_numbers<[1], [0], [0], [1], [0, 0, 1, 1], [], []>} : vector<16x16xf32>, vector<16x4xf32>, vector<16x4xf32> -> vector<16x4xf32>
    %87 = vector.shape_cast %8 : vector<4xf32> to vector<1x4xf32>
    %88 = vector.broadcast %87 : vector<1x4xf32> to vector<16x4xf32>
    %89 = arith.addf %86, %88 : vector<16x4xf32>
    %cst_18 = arith.constant 5.000000e-01 : f32
    %90 = vector.broadcast %cst_18 : f32 to vector<16x4xf32>
    %91 = arith.mulf %90, %89 : vector<16x4xf32>
    %92 = math.tanh %91 : vector<16x4xf32>
    %cst_19 = arith.constant 1.000000e+00 : f32
    %93 = vector.broadcast %cst_19 : f32 to vector<16x4xf32>
    %94 = arith.addf %92, %93 : vector<16x4xf32>
    %cst_20 = arith.constant 5.000000e-01 : f32
    %95 = vector.broadcast %cst_20 : f32 to vector<16x4xf32>
    %96 = arith.mulf %95, %94 : vector<16x4xf32>
    %97 = arith.mulf %89, %96 : vector<16x4xf32>
    %cst_21 = arith.constant dense<0.000000e+00> : vector<16x16xf32>
    %98 = tpu.matmul %97, %60, %cst_21 {dimension_numbers = #tpu.dot_dimension_numbers<[1], [0], [0], [1], [0, 0, 1, 1], [], []>} : vector<16x4xf32>, vector<4x16xf32>, vector<16x16xf32> -> vector<16x16xf32>
    %99 = vector.shape_cast %10 : vector<16xf32> to vector<1x16xf32>
    %100 = vector.broadcast %99 : vector<1x16xf32> to vector<16x16xf32>
    %101 = arith.addf %98, %100 : vector<16x16xf32>
    %102 = vector.shape_cast %101 : vector<16x16xf32> to vector<2x8x16xf32>
    %cst_22 = arith.constant 5.000000e-01 : f32
    %103 = vector.broadcast %cst_22 : f32 to vector<2x8x16xf32>
    %104 = arith.mulf %103, %102 : vector<2x8x16xf32>
    %105 = arith.addf %0, %104 : vector<2x8x16xf32>
    %cst_23 = arith.constant dense<0.000000e+00> : vector<2x8xf32>
    %106 = vector.multi_reduction <add>, %105, %cst_23 [2] : vector<2x8x16xf32> to vector<2x8xf32>
    %107 = vector.shape_cast %106 : vector<2x8xf32> to vector<2x8x1xf32>
    %cst_24 = arith.constant 1.600000e+01 : f32
    %108 = vector.broadcast %cst_24 : f32 to vector<2x8x1xf32>
    %109 = arith.divf %107, %108 : vector<2x8x1xf32>
    %110 = vector.broadcast %109 : vector<2x8x1xf32> to vector<2x8x16xf32>
    %111 = arith.subf %105, %110 : vector<2x8x16xf32>
    %112 = arith.mulf %111, %111 : vector<2x8x16xf32>
    %cst_25 = arith.constant dense<0.000000e+00> : vector<2x8xf32>
    %113 = vector.multi_reduction <add>, %112, %cst_25 [2] : vector<2x8x16xf32> to vector<2x8xf32>
    %114 = vector.shape_cast %113 : vector<2x8xf32> to vector<2x8x1xf32>
    %cst_26 = arith.constant 1.600000e+01 : f32
    %115 = vector.broadcast %cst_26 : f32 to vector<2x8x1xf32>
    %116 = arith.divf %114, %115 : vector<2x8x1xf32>
    %117 = vector.broadcast %109 : vector<2x8x1xf32> to vector<2x8x16xf32>
    %118 = arith.subf %105, %117 : vector<2x8x16xf32>
    %cst_27 = arith.constant 9.99999974E-6 : f32
    %119 = vector.broadcast %cst_27 : f32 to vector<2x8x1xf32>
    %120 = arith.addf %116, %119 : vector<2x8x1xf32>
    %121 = math.rsqrt %120 : vector<2x8x1xf32>
    %122 = vector.broadcast %121 : vector<2x8x1xf32> to vector<2x8x16xf32>
    %123 = arith.mulf %118, %122 : vector<2x8x16xf32>
    %124 = vector.shape_cast %12 : vector<16xf32> to vector<1x1x16xf32>
    %125 = vector.broadcast %124 : vector<1x1x16xf32> to vector<2x8x16xf32>
    %126 = arith.mulf %123, %125 : vector<2x8x16xf32>
    %127 = vector.shape_cast %14 : vector<16xf32> to vector<1x1x16xf32>
    %128 = vector.broadcast %127 : vector<1x1x16xf32> to vector<2x8x16xf32>
    %129 = arith.addf %126, %128 : vector<2x8x16xf32>
    %130 = vector.shape_cast %129 : vector<2x8x16xf32> to vector<16x16xf32>
    %c0_28 = arith.constant 0 : index
    %c0_29 = arith.constant 0 : index
    %131 = vector.load %arg5[%c0_28, %c0_29] : memref<16x48xf32, #tpu.memory_space<vmem>>, vector<16x48xf32>
    %cst_30 = arith.constant dense<0.000000e+00> : vector<16x48xf32>
    %132 = tpu.matmul %130, %131, %cst_30 {dimension_numbers = #tpu.dot_dimension_numbers<[1], [0], [0], [1], [0, 0, 1, 1], [], []>} : vector<16x16xf32>, vector<16x48xf32>, vector<16x48xf32> -> vector<16x48xf32>
    %133 = vector.extract_strided_slice %132 {offsets = [0, 0], sizes = [16, 16], strides = [1, 1]} : vector<16x48xf32> to vector<16x16xf32>
    %134 = vector.extract_strided_slice %132 {offsets = [0, 16], sizes = [16, 16], strides = [1, 1]} : vector<16x48xf32> to vector<16x16xf32>
    %135 = vector.extract_strided_slice %132 {offsets = [0, 32], sizes = [16, 16], strides = [1, 1]} : vector<16x48xf32> to vector<16x16xf32>
    %136 = vector.extract_strided_slice %133 {offsets = [0, 0], sizes = [16, 4], strides = [1, 1]} : vector<16x16xf32> to vector<16x4xf32>
    %137 = vector.shape_cast %136 : vector<16x4xf32> to vector<2x8x4xf32>
    %138 = vector.extract_strided_slice %133 {offsets = [0, 4], sizes = [16, 4], strides = [1, 1]} : vector<16x16xf32> to vector<16x4xf32>
    %139 = vector.shape_cast %138 : vector<16x4xf32> to vector<2x8x4xf32>
    %140 = vector.extract_strided_slice %133 {offsets = [0, 8], sizes = [16, 4], strides = [1, 1]} : vector<16x16xf32> to vector<16x4xf32>
    %141 = vector.shape_cast %140 : vector<16x4xf32> to vector<2x8x4xf32>
    %142 = vector.extract_strided_slice %133 {offsets = [0, 12], sizes = [16, 4], strides = [1, 1]} : vector<16x16xf32> to vector<16x4xf32>
    %143 = vector.shape_cast %142 : vector<16x4xf32> to vector<2x8x4xf32>
    %144 = tpu.concatenate %137, %139, %141, %143 in 0 : vector<2x8x4xf32>, vector<2x8x4xf32>, vector<2x8x4xf32>, vector<2x8x4xf32> -> vector<8x8x4xf32>
    %145 = vector.extract_strided_slice %134 {offsets = [0, 0], sizes = [16, 4], strides = [1, 1]} : vector<16x16xf32> to vector<16x4xf32>
    %146 = vector.shape_cast %145 : vector<16x4xf32> to vector<2x8x4xf32>
    %147 = vector.extract_strided_slice %134 {offsets = [0, 4], sizes = [16, 4], strides = [1, 1]} : vector<16x16xf32> to vector<16x4xf32>
    %148 = vector.shape_cast %147 : vector<16x4xf32> to vector<2x8x4xf32>
    %149 = vector.extract_strided_slice %134 {offsets = [0, 8], sizes = [16, 4], strides = [1, 1]} : vector<16x16xf32> to vector<16x4xf32>
    %150 = vector.shape_cast %149 : vector<16x4xf32> to vector<2x8x4xf32>
    %151 = vector.extract_strided_slice %134 {offsets = [0, 12], sizes = [16, 4], strides = [1, 1]} : vector<16x16xf32> to vector<16x4xf32>
    %152 = vector.shape_cast %151 : vector<16x4xf32> to vector<2x8x4xf32>
    %153 = tpu.concatenate %146, %148, %150, %152 in 0 : vector<2x8x4xf32>, vector<2x8x4xf32>, vector<2x8x4xf32>, vector<2x8x4xf32> -> vector<8x8x4xf32>
    %154 = vector.extract_strided_slice %135 {offsets = [0, 0], sizes = [16, 4], strides = [1, 1]} : vector<16x16xf32> to vector<16x4xf32>
    %155 = vector.shape_cast %154 : vector<16x4xf32> to vector<2x8x4xf32>
    %156 = vector.extract_strided_slice %135 {offsets = [0, 4], sizes = [16, 4], strides = [1, 1]} : vector<16x16xf32> to vector<16x4xf32>
    %157 = vector.shape_cast %156 : vector<16x4xf32> to vector<2x8x4xf32>
    %158 = vector.extract_strided_slice %135 {offsets = [0, 8], sizes = [16, 4], strides = [1, 1]} : vector<16x16xf32> to vector<16x4xf32>
    %159 = vector.shape_cast %158 : vector<16x4xf32> to vector<2x8x4xf32>
    %160 = vector.extract_strided_slice %135 {offsets = [0, 12], sizes = [16, 4], strides = [1, 1]} : vector<16x16xf32> to vector<16x4xf32>
    %161 = vector.shape_cast %160 : vector<16x4xf32> to vector<2x8x4xf32>
    %162 = tpu.concatenate %155, %157, %159, %161 in 0 : vector<2x8x4xf32>, vector<2x8x4xf32>, vector<2x8x4xf32>, vector<2x8x4xf32> -> vector<8x8x4xf32>
    "tpu.trace_start"() <{level = 10 : i32, message = "zid,zjd->zij"}> : () -> ()
    %cst_31 = arith.constant dense<0.000000e+00> : vector<8x8x8xf32>
    %163 = tpu.matmul %144, %153, %cst_31 {dimension_numbers = #tpu.dot_dimension_numbers<[2], [2], [1], [1], [0, 0, 0, 1, 1, 1], [0], [0]>} : vector<8x8x4xf32>, vector<8x8x4xf32>, vector<8x8x8xf32> -> vector<8x8x8xf32>
    "tpu.trace_stop"() : () -> ()
    %164 = tpu.transpose %144, [1, 0, 2] : vector<8x8x4xf32> -> vector<8x8x4xf32>
    "tpu.trace_start"() <{level = 10 : i32, message = "tzd,tdj->tzj"}> : () -> ()
    %cst_32 = arith.constant dense<0.000000e+00> : vector<8x8x8xf32>
    %165 = tpu.matmul %164, %1, %cst_32 {dimension_numbers = #tpu.dot_dimension_numbers<[2], [1], [1], [2], [0, 0, 0, 1, 1, 2], [0], [0]>} : vector<8x8x4xf32>, vector<8x4x8xf32>, vector<8x8x8xf32> -> vector<8x8x8xf32>
    "tpu.trace_stop"() : () -> ()
    %166 = tpu.transpose %165, [1, 0, 2] : vector<8x8x8xf32> -> vector<8x8x8xf32>
    %167 = arith.addf %163, %166 : vector<8x8x8xf32>
    %cst_33 = arith.constant dense<0xFF800000> : vector<8x8xf32>
    %168 = vector.multi_reduction <maximumf>, %167, %cst_33 [2] : vector<8x8x8xf32> to vector<8x8xf32>
    %169 = vector.shape_cast %168 : vector<8x8xf32> to vector<8x8x1xf32>
    %170 = vector.broadcast %169 : vector<8x8x1xf32> to vector<8x8x8xf32>
    %171 = arith.subf %167, %170 : vector<8x8x8xf32>
    %172 = math.exp %171 : vector<8x8x8xf32>
    %cst_34 = arith.constant dense<0.000000e+00> : vector<8x8xf32>
    %173 = vector.multi_reduction <add>, %172, %cst_34 [2] : vector<8x8x8xf32> to vector<8x8xf32>
    %174 = vector.shape_cast %173 : vector<8x8xf32> to vector<8x8x1xf32>
    %175 = vector.broadcast %174 : vector<8x8x1xf32> to vector<8x8x8xf32>
    %176 = arith.divf %172, %175 : vector<8x8x8xf32>
    "tpu.trace_start"() <{level = 10 : i32, message = "zij,zjd->zid"}> : () -> ()
    %cst_35 = arith.constant dense<0.000000e+00> : vector<8x8x4xf32>
    %177 = tpu.matmul %176, %162, %cst_35 {dimension_numbers = #tpu.dot_dimension_numbers<[2], [1], [1], [2], [0, 0, 0, 1, 1, 2], [0], [0]>} : vector<8x8x8xf32>, vector<8x8x4xf32>, vector<8x8x4xf32> -> vector<8x8x4xf32>
    "tpu.trace_stop"() : () -> ()
    %178 = vector.extract_strided_slice %177 {offsets = [0, 0, 0], sizes = [2, 8, 4], strides = [1, 1, 1]} : vector<8x8x4xf32> to vector<2x8x4xf32>
    %179 = vector.shape_cast %178 : vector<2x8x4xf32> to vector<16x4xf32>
    %180 = vector.extract_strided_slice %177 {offsets = [2, 0, 0], sizes = [2, 8, 4], strides = [1, 1, 1]} : vector<8x8x4xf32> to vector<2x8x4xf32>
    %181 = vector.shape_cast %180 : vector<2x8x4xf32> to vector<16x4xf32>
    %182 = vector.extract_strided_slice %177 {offsets = [4, 0, 0], sizes = [2, 8, 4], strides = [1, 1, 1]} : vector<8x8x4xf32> to vector<2x8x4xf32>
    %183 = vector.shape_cast %182 : vector<2x8x4xf32> to vector<16x4xf32>
    %184 = vector.extract_strided_slice %177 {offsets = [6, 0, 0], sizes = [2, 8, 4], strides = [1, 1, 1]} : vector<8x8x4xf32> to vector<2x8x4xf32>
    %185 = vector.shape_cast %184 : vector<2x8x4xf32> to vector<16x4xf32>
    %186 = tpu.concatenate %179, %181, %183, %185 in 1 : vector<16x4xf32>, vector<16x4xf32>, vector<16x4xf32>, vector<16x4xf32> -> vector<16x16xf32>
    %c0_36 = arith.constant 0 : index
    %c0_37 = arith.constant 0 : index
    %187 = vector.load %arg6[%c0_36, %c0_37] : memref<16x16xf32, #tpu.memory_space<vmem>>, vector<16x16xf32>
    %cst_38 = arith.constant dense<0.000000e+00> : vector<16x16xf32>
    %188 = tpu.matmul %186, %187, %cst_38 {dimension_numbers = #tpu.dot_dimension_numbers<[1], [0], [0], [1], [0, 0, 1, 1], [], []>} : vector<16x16xf32>, vector<16x16xf32>, vector<16x16xf32> -> vector<16x16xf32>
    %189 = vector.shape_cast %16 : vector<16xf32> to vector<1x16xf32>
    %190 = vector.broadcast %189 : vector<1x16xf32> to vector<16x16xf32>
    %191 = arith.addf %188, %190 : vector<16x16xf32>
    %192 = vector.shape_cast %191 : vector<16x16xf32> to vector<2x8x16xf32>
    %193 = arith.addf %105, %192 : vector<2x8x16xf32>
    %cst_39 = arith.constant dense<0.000000e+00> : vector<2x8xf32>
    %194 = vector.multi_reduction <add>, %193, %cst_39 [2] : vector<2x8x16xf32> to vector<2x8xf32>
    %195 = vector.shape_cast %194 : vector<2x8xf32> to vector<2x8x1xf32>
    %cst_40 = arith.constant 1.600000e+01 : f32
    %196 = vector.broadcast %cst_40 : f32 to vector<2x8x1xf32>
    %197 = arith.divf %195, %196 : vector<2x8x1xf32>
    %198 = vector.broadcast %197 : vector<2x8x1xf32> to vector<2x8x16xf32>
    %199 = arith.subf %193, %198 : vector<2x8x16xf32>
    %200 = arith.mulf %199, %199 : vector<2x8x16xf32>
    %cst_41 = arith.constant dense<0.000000e+00> : vector<2x8xf32>
    %201 = vector.multi_reduction <add>, %200, %cst_41 [2] : vector<2x8x16xf32> to vector<2x8xf32>
    %202 = vector.shape_cast %201 : vector<2x8xf32> to vector<2x8x1xf32>
    %cst_42 = arith.constant 1.600000e+01 : f32
    %203 = vector.broadcast %cst_42 : f32 to vector<2x8x1xf32>
    %204 = arith.divf %202, %203 : vector<2x8x1xf32>
    %205 = vector.broadcast %197 : vector<2x8x1xf32> to vector<2x8x16xf32>
    %206 = arith.subf %193, %205 : vector<2x8x16xf32>
    %cst_43 = arith.constant 9.99999974E-6 : f32
    %207 = vector.broadcast %cst_43 : f32 to vector<2x8x1xf32>
    %208 = arith.addf %204, %207 : vector<2x8x1xf32>
    %209 = math.rsqrt %208 : vector<2x8x1xf32>
    %210 = vector.broadcast %209 : vector<2x8x1xf32> to vector<2x8x16xf32>
    %211 = arith.mulf %206, %210 : vector<2x8x16xf32>
    %212 = vector.shape_cast %18 : vector<16xf32> to vector<1x1x16xf32>
    %213 = vector.broadcast %212 : vector<1x1x16xf32> to vector<2x8x16xf32>
    %214 = arith.mulf %211, %213 : vector<2x8x16xf32>
    %215 = vector.shape_cast %20 : vector<16xf32> to vector<1x1x16xf32>
    %216 = vector.broadcast %215 : vector<1x1x16xf32> to vector<2x8x16xf32>
    %217 = arith.addf %214, %216 : vector<2x8x16xf32>
    %218 = vector.shape_cast %217 : vector<2x8x16xf32> to vector<16x16xf32>
    %c0_44 = arith.constant 0 : index
    %c0_45 = arith.constant 0 : index
    %219 = vector.load %arg7[%c0_44, %c0_45] : memref<16x8xf32, #tpu.memory_space<vmem>>, vector<16x8xf32>
    %cst_46 = arith.constant dense<0.000000e+00> : vector<16x8xf32>
    %220 = tpu.matmul %218, %219, %cst_46 {dimension_numbers = #tpu.dot_dimension_numbers<[1], [0], [0], [1], [0, 0, 1, 1], [], []>} : vector<16x16xf32>, vector<16x8xf32>, vector<16x8xf32> -> vector<16x8xf32>
    %221 = vector.shape_cast %22 : vector<8xf32> to vector<1x8xf32>
    %222 = vector.broadcast %221 : vector<1x8xf32> to vector<16x8xf32>
    %223 = arith.addf %220, %222 : vector<16x8xf32>
    %224 = vector.extract_strided_slice %223 {offsets = [0, 0], sizes = [16, 4], strides = [1, 1]} : vector<16x8xf32> to vector<16x4xf32>
    %225 = vector.extract_strided_slice %223 {offsets = [0, 4], sizes = [16, 4], strides = [1, 1]} : vector<16x8xf32> to vector<16x4xf32>
    %cst_47 = arith.constant 5.000000e-01 : f32
    %226 = vector.broadcast %cst_47 : f32 to vector<16x4xf32>
    %227 = arith.mulf %226, %225 : vector<16x4xf32>
    %228 = math.tanh %227 : vector<16x4xf32>
    %cst_48 = arith.constant 1.000000e+00 : f32
    %229 = vector.broadcast %cst_48 : f32 to vector<16x4xf32>
    %230 = arith.addf %228, %229 : vector<16x4xf32>
    %cst_49 = arith.constant 5.000000e-01 : f32
    %231 = vector.broadcast %cst_49 : f32 to vector<16x4xf32>
    %232 = arith.mulf %231, %230 : vector<16x4xf32>
    %233 = arith.mulf %224, %232 : vector<16x4xf32>
    %234 = vector.shape_cast %233 : vector<16x4xf32> to vector<2x8x4xf32>
    %235 = tpu.iota {dimensions = array<i32: 1>} : vector<2x8x4xi32>
    %c0_i32 = arith.constant 0 : i32
    %236 = vector.broadcast %c0_i32 : i32 to vector<2x8x4xi32>
    %237 = arith.cmpi eq, %235, %236 : vector<2x8x4xi32>
    %c1_i32 = arith.constant 1 : i32
    %238 = tpu.dynamic_rotate %234 by %c1_i32 dim 1 : vector<2x8x4xf32>, i32 -> vector<2x8x4xf32>
    %cst_50 = arith.constant 0.000000e+00 : f32
    %239 = vector.broadcast %cst_50 : f32 to vector<2x8x4xf32>
    %240 = arith.select %237, %239, %238 : vector<2x8x4xi1>, vector<2x8x4xf32>
    %c7_i32 = arith.constant 7 : i32
    %241 = vector.broadcast %c7_i32 : i32 to vector<2x8x4xi32>
    %242 = arith.cmpi eq, %235, %241 : vector<2x8x4xi32>
    %c7_i32_51 = arith.constant 7 : i32
    %243 = tpu.dynamic_rotate %234 by %c7_i32_51 dim 1 : vector<2x8x4xf32>, i32 -> vector<2x8x4xf32>
    %cst_52 = arith.constant 0.000000e+00 : f32
    %244 = vector.broadcast %cst_52 : f32 to vector<2x8x4xf32>
    %245 = arith.select %242, %244, %243 : vector<2x8x4xi1>, vector<2x8x4xf32>
    %246 = vector.shape_cast %24 : vector<4xf32> to vector<1x1x4xf32>
    %247 = vector.broadcast %246 : vector<1x1x4xf32> to vector<2x8x4xf32>
    %248 = arith.mulf %240, %247 : vector<2x8x4xf32>
    %249 = vector.shape_cast %26 : vector<4xf32> to vector<1x1x4xf32>
    %250 = vector.broadcast %249 : vector<1x1x4xf32> to vector<2x8x4xf32>
    %251 = arith.mulf %234, %250 : vector<2x8x4xf32>
    %252 = arith.addf %248, %251 : vector<2x8x4xf32>
    %253 = vector.shape_cast %28 : vector<4xf32> to vector<1x1x4xf32>
    %254 = vector.broadcast %253 : vector<1x1x4xf32> to vector<2x8x4xf32>
    %255 = arith.mulf %245, %254 : vector<2x8x4xf32>
    %256 = arith.addf %252, %255 : vector<2x8x4xf32>
    %257 = vector.shape_cast %30 : vector<4xf32> to vector<1x1x4xf32>
    %258 = vector.broadcast %257 : vector<1x1x4xf32> to vector<2x8x4xf32>
    %259 = arith.addf %256, %258 : vector<2x8x4xf32>
    %260 = vector.shape_cast %32 : vector<4xf32> to vector<1x1x4xf32>
    %261 = vector.broadcast %260 : vector<1x1x4xf32> to vector<2x8x4xf32>
    %262 = arith.mulf %259, %261 : vector<2x8x4xf32>
    %263 = vector.shape_cast %34 : vector<4xf32> to vector<1x1x4xf32>
    %264 = vector.broadcast %263 : vector<1x1x4xf32> to vector<2x8x4xf32>
    %265 = arith.addf %262, %264 : vector<2x8x4xf32>
    %cst_53 = arith.constant 5.000000e-01 : f32
    %266 = vector.broadcast %cst_53 : f32 to vector<2x8x4xf32>
    %267 = arith.mulf %266, %265 : vector<2x8x4xf32>
    %268 = math.tanh %267 : vector<2x8x4xf32>
    %cst_54 = arith.constant 1.000000e+00 : f32
    %269 = vector.broadcast %cst_54 : f32 to vector<2x8x4xf32>
    %270 = arith.addf %268, %269 : vector<2x8x4xf32>
    %cst_55 = arith.constant 5.000000e-01 : f32
    %271 = vector.broadcast %cst_55 : f32 to vector<2x8x4xf32>
    %272 = arith.mulf %271, %270 : vector<2x8x4xf32>
    %273 = arith.mulf %265, %272 : vector<2x8x4xf32>
    %274 = vector.shape_cast %273 : vector<2x8x4xf32> to vector<16x4xf32>
    %c0_56 = arith.constant 0 : index
    %c0_57 = arith.constant 0 : index
    %275 = vector.load %arg8[%c0_56, %c0_57] : memref<4x16xf32, #tpu.memory_space<vmem>>, vector<4x16xf32>
    %cst_58 = arith.constant dense<0.000000e+00> : vector<16x16xf32>
    %276 = tpu.matmul %274, %275, %cst_58 {dimension_numbers = #tpu.dot_dimension_numbers<[1], [0], [0], [1], [0, 0, 1, 1], [], []>} : vector<16x4xf32>, vector<4x16xf32>, vector<16x16xf32> -> vector<16x16xf32>
    %277 = vector.shape_cast %36 : vector<16xf32> to vector<1x16xf32>
    %278 = vector.broadcast %277 : vector<1x16xf32> to vector<16x16xf32>
    %279 = arith.addf %276, %278 : vector<16x16xf32>
    %280 = vector.shape_cast %279 : vector<16x16xf32> to vector<2x8x16xf32>
    %281 = arith.addf %193, %280 : vector<2x8x16xf32>
    %c1 = arith.constant 1 : index
    %c0_59 = arith.constant 0 : index
    %c0_60 = arith.constant 0 : index
    %282 = vector.load %arg3[%c1, %c0_59, %c0_60] : memref<2x16x4xf32, #tpu.memory_space<vmem>>, vector<1x16x4xf32>
    %283 = vector.shape_cast %282 : vector<1x16x4xf32> to vector<16x4xf32>
    %c1_61 = arith.constant 1 : index
    %c0_62 = arith.constant 0 : index
    %c0_63 = arith.constant 0 : index
    %284 = vector.load %arg4[%c1_61, %c0_62, %c0_63] : memref<2x4x16xf32, #tpu.memory_space<vmem>>, vector<1x4x16xf32>
    %285 = vector.shape_cast %284 : vector<1x4x16xf32> to vector<4x16xf32>
    %cst_64 = arith.constant dense<0.000000e+00> : vector<2x8xf32>
    %286 = vector.multi_reduction <add>, %281, %cst_64 [2] : vector<2x8x16xf32> to vector<2x8xf32>
    %287 = vector.shape_cast %286 : vector<2x8xf32> to vector<2x8x1xf32>
    %cst_65 = arith.constant 1.600000e+01 : f32
    %288 = vector.broadcast %cst_65 : f32 to vector<2x8x1xf32>
    %289 = arith.divf %287, %288 : vector<2x8x1xf32>
    %290 = vector.broadcast %289 : vector<2x8x1xf32> to vector<2x8x16xf32>
    %291 = arith.subf %281, %290 : vector<2x8x16xf32>
    %292 = arith.mulf %291, %291 : vector<2x8x16xf32>
    %cst_66 = arith.constant dense<0.000000e+00> : vector<2x8xf32>
    %293 = vector.multi_reduction <add>, %292, %cst_66 [2] : vector<2x8x16xf32> to vector<2x8xf32>
    %294 = vector.shape_cast %293 : vector<2x8xf32> to vector<2x8x1xf32>
    %cst_67 = arith.constant 1.600000e+01 : f32
    %295 = vector.broadcast %cst_67 : f32 to vector<2x8x1xf32>
    %296 = arith.divf %294, %295 : vector<2x8x1xf32>
    %297 = vector.broadcast %289 : vector<2x8x1xf32> to vector<2x8x16xf32>
    %298 = arith.subf %281, %297 : vector<2x8x16xf32>
    %cst_68 = arith.constant 9.99999974E-6 : f32
    %299 = vector.broadcast %cst_68 : f32 to vector<2x8x1xf32>
    %300 = arith.addf %296, %299 : vector<2x8x1xf32>
    %301 = math.rsqrt %300 : vector<2x8x1xf32>
    %302 = vector.broadcast %301 : vector<2x8x1xf32> to vector<2x8x16xf32>
    %303 = arith.mulf %298, %302 : vector<2x8x16xf32>
    %304 = vector.shape_cast %38 : vector<16xf32> to vector<1x1x16xf32>
    %305 = vector.broadcast %304 : vector<1x1x16xf32> to vector<2x8x16xf32>
    %306 = arith.mulf %303, %305 : vector<2x8x16xf32>
    %307 = vector.shape_cast %40 : vector<16xf32> to vector<1x1x16xf32>
    %308 = vector.broadcast %307 : vector<1x1x16xf32> to vector<2x8x16xf32>
    %309 = arith.addf %306, %308 : vector<2x8x16xf32>
    %310 = vector.shape_cast %309 : vector<2x8x16xf32> to vector<16x16xf32>
    %cst_69 = arith.constant dense<0.000000e+00> : vector<16x4xf32>
    %311 = tpu.matmul %310, %283, %cst_69 {dimension_numbers = #tpu.dot_dimension_numbers<[1], [0], [0], [1], [0, 0, 1, 1], [], []>} : vector<16x16xf32>, vector<16x4xf32>, vector<16x4xf32> -> vector<16x4xf32>
    %312 = vector.shape_cast %42 : vector<4xf32> to vector<1x4xf32>
    %313 = vector.broadcast %312 : vector<1x4xf32> to vector<16x4xf32>
    %314 = arith.addf %311, %313 : vector<16x4xf32>
    %cst_70 = arith.constant 5.000000e-01 : f32
    %315 = vector.broadcast %cst_70 : f32 to vector<16x4xf32>
    %316 = arith.mulf %315, %314 : vector<16x4xf32>
    %317 = math.tanh %316 : vector<16x4xf32>
    %cst_71 = arith.constant 1.000000e+00 : f32
    %318 = vector.broadcast %cst_71 : f32 to vector<16x4xf32>
    %319 = arith.addf %317, %318 : vector<16x4xf32>
    %cst_72 = arith.constant 5.000000e-01 : f32
    %320 = vector.broadcast %cst_72 : f32 to vector<16x4xf32>
    %321 = arith.mulf %320, %319 : vector<16x4xf32>
    %322 = arith.mulf %314, %321 : vector<16x4xf32>
    %cst_73 = arith.constant dense<0.000000e+00> : vector<16x16xf32>
    %323 = tpu.matmul %322, %285, %cst_73 {dimension_numbers = #tpu.dot_dimension_numbers<[1], [0], [0], [1], [0, 0, 1, 1], [], []>} : vector<16x4xf32>, vector<4x16xf32>, vector<16x16xf32> -> vector<16x16xf32>
    %324 = vector.shape_cast %44 : vector<16xf32> to vector<1x16xf32>
    %325 = vector.broadcast %324 : vector<1x16xf32> to vector<16x16xf32>
    %326 = arith.addf %323, %325 : vector<16x16xf32>
    %327 = vector.shape_cast %326 : vector<16x16xf32> to vector<2x8x16xf32>
    %cst_74 = arith.constant 5.000000e-01 : f32
    %328 = vector.broadcast %cst_74 : f32 to vector<2x8x16xf32>
    %329 = arith.mulf %328, %327 : vector<2x8x16xf32>
    %330 = arith.addf %281, %329 : vector<2x8x16xf32>
    %cst_75 = arith.constant dense<0.000000e+00> : vector<2x8xf32>
    %331 = vector.multi_reduction <add>, %330, %cst_75 [2] : vector<2x8x16xf32> to vector<2x8xf32>
    %332 = vector.shape_cast %331 : vector<2x8xf32> to vector<2x8x1xf32>
    %cst_76 = arith.constant 1.600000e+01 : f32
    %333 = vector.broadcast %cst_76 : f32 to vector<2x8x1xf32>
    %334 = arith.divf %332, %333 : vector<2x8x1xf32>
    %335 = vector.broadcast %334 : vector<2x8x1xf32> to vector<2x8x16xf32>
    %336 = arith.subf %330, %335 : vector<2x8x16xf32>
    %337 = arith.mulf %336, %336 : vector<2x8x16xf32>
    %cst_77 = arith.constant dense<0.000000e+00> : vector<2x8xf32>
    %338 = vector.multi_reduction <add>, %337, %cst_77 [2] : vector<2x8x16xf32> to vector<2x8xf32>
    %339 = vector.shape_cast %338 : vector<2x8xf32> to vector<2x8x1xf32>
    %cst_78 = arith.constant 1.600000e+01 : f32
    %340 = vector.broadcast %cst_78 : f32 to vector<2x8x1xf32>
    %341 = arith.divf %339, %340 : vector<2x8x1xf32>
    %342 = vector.broadcast %334 : vector<2x8x1xf32> to vector<2x8x16xf32>
    %343 = arith.subf %330, %342 : vector<2x8x16xf32>
    %cst_79 = arith.constant 9.99999974E-6 : f32
    %344 = vector.broadcast %cst_79 : f32 to vector<2x8x1xf32>
    %345 = arith.addf %341, %344 : vector<2x8x1xf32>
    %346 = math.rsqrt %345 : vector<2x8x1xf32>
    %347 = vector.broadcast %346 : vector<2x8x1xf32> to vector<2x8x16xf32>
    %348 = arith.mulf %343, %347 : vector<2x8x16xf32>
    %349 = vector.shape_cast %46 : vector<16xf32> to vector<1x1x16xf32>
    %350 = vector.broadcast %349 : vector<1x1x16xf32> to vector<2x8x16xf32>
    %351 = arith.mulf %348, %350 : vector<2x8x16xf32>
    %352 = vector.shape_cast %48 : vector<16xf32> to vector<1x1x16xf32>
    %353 = vector.broadcast %352 : vector<1x1x16xf32> to vector<2x8x16xf32>
    %354 = arith.addf %351, %353 : vector<2x8x16xf32>
    %355 = tpu.transpose %354, [1, 0, 2] : vector<2x8x16xf32> -> vector<8x2x16xf32>
    %356 = vector.shape_cast %355 : vector<8x2x16xf32> to vector<16x16xf32>
    %c0_80 = arith.constant 0 : index
    %c0_81 = arith.constant 0 : index
    %357 = vector.load %arg9[%c0_80, %c0_81] : memref<16x16xf32, #tpu.memory_space<vmem>>, vector<16x16xf32>
    %cst_82 = arith.constant dense<0.000000e+00> : vector<16x16xf32>
    %358 = tpu.matmul %356, %357, %cst_82 {dimension_numbers = #tpu.dot_dimension_numbers<[1], [0], [0], [1], [0, 0, 1, 1], [], []>} : vector<16x16xf32>, vector<16x16xf32>, vector<16x16xf32> -> vector<16x16xf32>
    %359 = vector.shape_cast %50 : vector<16xf32> to vector<1x16xf32>
    %360 = vector.broadcast %359 : vector<1x16xf32> to vector<16x16xf32>
    %361 = arith.addf %358, %360 : vector<16x16xf32>
    %362 = vector.shape_cast %361 : vector<16x16xf32> to vector<8x2x16xf32>
    %c0_83 = arith.constant 0 : index
    %c0_84 = arith.constant 0 : index
    %c0_85 = arith.constant 0 : index
    %363 = vector.load %arg13[%c0_83, %c0_84, %c0_85] : memref<8x2x16xf32, #tpu.memory_space<vmem>>, vector<8x2x16xf32>
    tpu.vector_store %arg13[%c0_83, %c0_84, %c0_85], %362 {strides = array<i32>} : memref<8x2x16xf32, #tpu.memory_space<vmem>>, vector<8x2x16xf32>,
    %c0_86 = arith.constant 0 : index
    %c0_87 = arith.constant 0 : index
    %364 = vector.load %arg10[%c0_86, %c0_87] : memref<4x16xf32, #tpu.memory_space<vmem>>, vector<4x16xf32>
    %cst_88 = arith.constant 0.000000e+00 : f32
    %365 = vector.broadcast %cst_88 : f32 to vector<2x4xf32>
    %c0_i32_89 = arith.constant 0 : i32
    %c8_i32 = arith.constant 8 : i32
    %366 = arith.addi %c0_i32_89, %c8_i32 : i32
    %c1_i32_90 = arith.constant 1 : i32
    %367:3 = scf.for %arg14 = %c0_i32_89 to %366 step %c1_i32_90 iter_args(%arg15 = %365, %arg16 = %365, %arg17 = %365) -> (vector<2x4xf32>, vector<2x4xf32>, vector<2x4xf32>)  : i32 {
      %376 = vector.extract_strided_slice %arg15 {offsets = [0, 0], sizes = [2, 1], strides = [1, 1]} : vector<2x4xf32> to vector<2x1xf32>
      %377 = vector.extract_strided_slice %364 {offsets = [0, 0], sizes = [1, 16], strides = [1, 1]} : vector<4x16xf32> to vector<1x16xf32>
      %378 = vector.shape_cast %377 : vector<1x16xf32> to vector<16xf32>
      %379 = vector.shape_cast %378 : vector<16xf32> to vector<1x16xf32>
      %380 = vector.broadcast %376 : vector<2x1xf32> to vector<2x16xf32>
      %381 = vector.broadcast %379 : vector<1x16xf32> to vector<2x16xf32>
      %382 = arith.mulf %380, %381 : vector<2x16xf32>
      %383 = vector.extract_strided_slice %arg15 {offsets = [0, 1], sizes = [2, 1], strides = [1, 1]} : vector<2x4xf32> to vector<2x1xf32>
      %384 = vector.extract_strided_slice %364 {offsets = [1, 0], sizes = [1, 16], strides = [1, 1]} : vector<4x16xf32> to vector<1x16xf32>
      %385 = vector.shape_cast %384 : vector<1x16xf32> to vector<16xf32>
      %386 = vector.shape_cast %385 : vector<16xf32> to vector<1x16xf32>
      %387 = vector.broadcast %383 : vector<2x1xf32> to vector<2x16xf32>
      %388 = vector.broadcast %386 : vector<1x16xf32> to vector<2x16xf32>
      %389 = arith.mulf %387, %388 : vector<2x16xf32>
      %390 = arith.addf %382, %389 : vector<2x16xf32>
      %391 = vector.extract_strided_slice %arg15 {offsets = [0, 2], sizes = [2, 1], strides = [1, 1]} : vector<2x4xf32> to vector<2x1xf32>
      %392 = vector.extract_strided_slice %364 {offsets = [2, 0], sizes = [1, 16], strides = [1, 1]} : vector<4x16xf32> to vector<1x16xf32>
      %393 = vector.shape_cast %392 : vector<1x16xf32> to vector<16xf32>
      %394 = vector.shape_cast %393 : vector<16xf32> to vector<1x16xf32>
      %395 = vector.broadcast %391 : vector<2x1xf32> to vector<2x16xf32>
      %396 = vector.broadcast %394 : vector<1x16xf32> to vector<2x16xf32>
      %397 = arith.mulf %395, %396 : vector<2x16xf32>
      %398 = arith.addf %390, %397 : vector<2x16xf32>
      %399 = vector.extract_strided_slice %arg15 {offsets = [0, 3], sizes = [2, 1], strides = [1, 1]} : vector<2x4xf32> to vector<2x1xf32>
      %400 = vector.extract_strided_slice %364 {offsets = [3, 0], sizes = [1, 16], strides = [1, 1]} : vector<4x16xf32> to vector<1x16xf32>
      %401 = vector.shape_cast %400 : vector<1x16xf32> to vector<16xf32>
      %402 = vector.shape_cast %401 : vector<16xf32> to vector<1x16xf32>
      %403 = vector.broadcast %399 : vector<2x1xf32> to vector<2x16xf32>
      %404 = vector.broadcast %402 : vector<1x16xf32> to vector<2x16xf32>
      %405 = arith.mulf %403, %404 : vector<2x16xf32>
      %406 = arith.addf %398, %405 : vector<2x16xf32>
      %407 = arith.index_cast %arg14 : i32 to index
      %c0_98 = arith.constant 0 : index
      %c0_99 = arith.constant 0 : index
      %408 = vector.load %arg13[%407, %c0_98, %c0_99] : memref<8x2x16xf32, #tpu.memory_space<vmem>>, vector<1x2x16xf32>
      %409 = vector.shape_cast %408 : vector<1x2x16xf32> to vector<2x16xf32>
      %410 = arith.addf %409, %406 : vector<2x16xf32>
      %411 = vector.shape_cast %52 : vector<16xf32> to vector<1x16xf32>
      %412 = vector.broadcast %411 : vector<1x16xf32> to vector<2x16xf32>
      %413 = arith.mulf %410, %412 : vector<2x16xf32>
      %414 = math.tanh %413 : vector<2x16xf32>
      %415 = vector.shape_cast %52 : vector<16xf32> to vector<1x16xf32>
      %416 = vector.broadcast %415 : vector<1x16xf32> to vector<2x16xf32>
      %417 = arith.mulf %414, %416 : vector<2x16xf32>
      %418 = vector.shape_cast %54 : vector<16xf32> to vector<1x16xf32>
      %419 = vector.broadcast %418 : vector<1x16xf32> to vector<2x16xf32>
      %420 = arith.addf %417, %419 : vector<2x16xf32>
      %421 = vector.extract_strided_slice %420 {offsets = [0, 0], sizes = [2, 4], strides = [1, 1]} : vector<2x16xf32> to vector<2x4xf32>
      %422 = vector.extract_strided_slice %420 {offsets = [0, 4], sizes = [2, 4], strides = [1, 1]} : vector<2x16xf32> to vector<2x4xf32>
      %423 = vector.extract_strided_slice %420 {offsets = [0, 8], sizes = [2, 4], strides = [1, 1]} : vector<2x16xf32> to vector<2x4xf32>
      %424 = vector.extract_strided_slice %420 {offsets = [0, 12], sizes = [2, 4], strides = [1, 1]} : vector<2x16xf32> to vector<2x4xf32>
      %425 = arith.mulf %422, %arg16 : vector<2x4xf32>
      %426 = arith.mulf %421, %423 : vector<2x4xf32>
      %427 = arith.addf %425, %426 : vector<2x4xf32>
      %428 = math.tanh %427 : vector<2x4xf32>
      %429 = arith.mulf %424, %428 : vector<2x4xf32>
      %430 = arith.addf %arg17, %429 : vector<2x4xf32>
      scf.yield %429, %427, %430 : vector<2x4xf32>, vector<2x4xf32>, vector<2x4xf32>
    }
    %c8_i32_91 = arith.constant 8 : i32
    %cst_92 = arith.constant 1.250000e-01 : f32
    %368 = vector.broadcast %cst_92 : f32 to vector<2x4xf32>
    %369 = arith.mulf %367#2, %368 : vector<2x4xf32>
    %c0_93 = arith.constant 0 : index
    %c0_94 = arith.constant 0 : index
    %370 = vector.load %arg11[%c0_93, %c0_94] : memref<4x2xf32, #tpu.memory_space<vmem>>, vector<4x2xf32>
    %cst_95 = arith.constant dense<0.000000e+00> : vector<2x2xf32>
    %371 = tpu.matmul %369, %370, %cst_95 {dimension_numbers = #tpu.dot_dimension_numbers<[1], [0], [0], [1], [0, 0, 1, 1], [], []>} : vector<2x4xf32>, vector<4x2xf32>, vector<2x2xf32> -> vector<2x2xf32>
    %372 = vector.shape_cast %56 : vector<2xf32> to vector<1x2xf32>
    %373 = vector.broadcast %372 : vector<1x2xf32> to vector<2x2xf32>
    %374 = arith.addf %371, %373 : vector<2x2xf32>
    %c0_96 = arith.constant 0 : index
    %c0_97 = arith.constant 0 : index
    %375 = vector.load %arg12[%c0_96, %c0_97] : memref<2x2xf32, #tpu.memory_space<vmem>>, vector<2x2xf32>
    tpu.vector_store %arg12[%c0_96, %c0_97], %374 {strides = array<i32>} : memref<2x2xf32, #tpu.memory_space<vmem>>, vector<2x2xf32>,
    return
  }
}

</mosaic_0001>

<bundles_post_ra>
// kernel: tpu_custom_call.1
= control target key start
LH: loop header
LB: loop body
LE: loop exit
PB: predicated region body
PF: predicated region fallthrough
CT: control target
= control target key end

     0   :  { %vm59_vm0 = vcmask 130048   ;;  %s4956_s0 = inlined_call_operand.vmem [shape: f32[2,8,16], index: 0, kind: input, shape index: {}]   ;;  %s4957_s1 = inlined_call_operand.vmem [shape: f32[8,4,8], index: 1, kind: input, shape index: {}]   ;;  %s4958_s2 = inlined_call_operand.vmem [shape: f32[27,16], index: 2, kind: input, shape index: {}]   ;;  %s4959_s3 = inlined_call_operand.vmem [shape: f32[2,16,4], index: 3, kind: input, shape index: {}]   ;;  %s4960_s4 = inlined_call_operand.vmem [shape: f32[2,4,16], index: 4, kind: input, shape index: {}]   ;;  %s4961_s5 = inlined_call_operand.vmem [shape: f32[16,48], index: 5, kind: input, shape index: {}]   ;;  %s4962_s6 = inlined_call_operand.vmem [shape: f32[16,16], index: 6, kind: input, shape index: {}]   ;;  %s4963_s7 = inlined_call_operand.vmem [shape: f32[16,8], index: 7, kind: input, shape index: {}]   ;;  %s4964_s8 = inlined_call_operand.vmem [shape: f32[4,16], index: 8, kind: input, shape index: {}]   ;;  %s4965_s9 = inlined_call_operand.vmem [shape: f32[16,16], index: 9, kind: input, shape index: {}]   ;;  %s4966_s10 = inlined_call_operand.vmem [shape: f32[4,16], index: 10, kind: input, shape index: {}]   ;;  %s4967_s11 = inlined_call_operand.vmem [shape: f32[4,2], index: 11, kind: input, shape index: {}]   ;;  %s4968_s12 = inlined_call_operand.hbm [shape: f32[2,2], index: 12, kind: output, shape index: {}]  }
   0x1   :  { %v4348_v0 = vld [vmem:[%s4956_s0] sm:$0xff]  ;;  %v4353_v1 = vld [vmem:[%s4956_s0 + $0x8] sm:$0xff] }
   0x2   :  { %17 = vsyncpa [#allocation4], 0  ;;  %v60_v2 = vsel %vm59_vm0, %v4348_v0, 0.0  ;;  %v63_v3 = vsel %vm59_vm0, %v4353_v1, 0.0  ;;  %v4366_v14 = vld [vmem:[%s4958_s2 + $0x18] sm:$0x7]  ;;  %v87_v22 = vlaneseq }
   0x3   :  { %61 = vadd.xlane.f32.xlu0 %v60_v2  ;;  %v57_v15 = vld [vmem:[%s4959_s3 + $0x8] sm:$0xff]  ;;  %v56_v16 = vld [vmem:[%s4959_s3] sm:$0xff]  ;;  %vm205_vm1 = vcmask 1043456   ;;  %vm198_vm2 = vcmask 31744   ;;  %s4261_s22 = smov 120   ;;  %s4263_s0 = smov 116  }
   0x4   :  { %3894 = vmatprep.subr.mxu0 %v57_v15  ;;  %v4374_v24 = vshrl.u32 %v87_v22, 7  ;;  %v4382_v26 = vld [vmem:[%s4958_s2] sm:$0xff]  ;;  %vm4264_vm3 = vmmov 0   ;;  %s4265_s25 = smov 112   ;;  %vm1917_vm4 = vcmask 64512   ;;  %s4271_s26 = smov 12  }
   0x5   :  { %3895 = vmatpush3.msra.mxu0 %v57_v15  ;;  %v58_v38 = vld [vmem:[%s4960_s4] sm:$0xf]  ;;  %vm2642_vm5 = vcmask 97280   ;;  %vm3535_vm8 = vcmask 123904  }
   0x6   :  { %3896 = vmatprep.subr.mxu0 %v56_v16  ;;  %v4377_v25 = vsub.s32 0, %v4374_v24  ;;  %v4385_v27 = vsub.s32 1, %v4374_v24  ;;  %3901 = vmatprep.subr.msk.mxu1 %vm205_vm1, %v58_v38  ;;  %v4399_v39 = vsub.s32 2, %v4374_v24  ;;  %v4406_v55 = vsub.s32 3, %v4374_v24  ;;  %v326_v15 = vld [vmem:[%s4961_s5] sm:$0xff] }
   0x7   :  { %64 = vadd.xlane.f32.xlu0 %v63_v3  ;;  %3897 = vmatpush3.msra.mxu0 %v56_v16  ;;  %v4431_v22 = vsub.s32 4, %v4374_v24  ;;  %vm2879_vm6 = vcmp.eq.s32.totalorder %v4374_v24, 0  ;;  %vm2884_vm7 = vcmp.eq.s32.totalorder %v4374_v24, 7 }
   0x8   :  { %v90_v28 = vrot.slane %v4382_v26, %v4377_v25  ;;  %v96_v31 = vrot.slane %v4382_v26, %v4385_v27  ;;  %3902 = vmatpush3.msk.msra.mxu1 %vm205_vm1, %v58_v38  ;;  %v102_v40 = vrot.slane %v4382_v26, %v4399_v39  ;;  %v197_v56 = vrot.slane %v4382_v26, %v4406_v55 }
  0x8c   :  { %v62_v4 = vpop.xlane.xlu0 %61 }
  0x8d   :  { %v67_v5 = vmul.f32 0.0625, %v62_v4 }
  0x8f   :  { %v69_v6 = vsub.f32 %v4348_v0, %v67_v5 }
  0x90   :  { %v65_v7 = vpop.xlane.xlu0 %64 }
  0x91   :  { %v68_v8 = vmul.f32 0.0625, %v65_v7  ;;  %v71_v9 = vmul.f32 %v69_v6, %v69_v6 }
  0x93   :  { %v70_v10 = vsub.f32 %v4353_v1, %v68_v8  ;;  %v73_v11 = vsel %vm59_vm0, %v71_v9, 0.0 }
  0x94   :  { %74 = vadd.xlane.f32.xlu1 %v73_v11 }
  0x95   :  { %v72_v12 = vmul.f32 %v70_v10, %v70_v10 }
  0x97   :  { %v76_v13 = vsel %vm59_vm0, %v72_v12, 0.0 }
  0x98   :  { %77 = vadd.xlane.f32.xlu1 %v76_v13  ;;  %v327_v13 = vld [vmem:[%s4961_s5 + $0x8] sm:$0xff]  ;;  %s4260_s5 = smov 124  }
  0x99   :  { %3906 = vmatprep.subr.mxu1 %v327_v13 }
 0x11d   :  { %v75_v17 = vpop.xlane.xlu1 %74 }
 0x11e   :  { %v79_v18 = vmul.f32 0.0625, %v75_v17 }
 0x120   :  { %v81_v19 = vadd.f32 1e-05, %v79_v18 }
 0x121   :  { %v78_v20 = vpop.xlane.xlu1 %77 }
 0x122   :  { %4128 = vrsqrt.f32 %v81_v19  ;;  %v80_v21 = vmul.f32 0.0625, %v78_v20 }
 0x124   :  { %v82_v23 = vadd.f32 1e-05, %v80_v21 }
 0x126   :  { %4130 = vrsqrt.f32 %v82_v23 }
 0x12f   :  { %v4129_v29 = vpop.eup %4128 }
 0x130   :  { %v85_v30 = vmul.f32 %v4129_v29, %v69_v6  ;;  %v4436_v29 = vsub.s32 5, %v4374_v24 }
 0x132   :  { %v91_v32 = vmul.f32 %v90_v28, %v85_v30 }
 0x133   :  { %v4131_v33 = vpop.eup %4130 }
 0x134   :  { %v86_v34 = vmul.f32 %v4131_v33, %v70_v10  ;;  %v97_v35 = vadd.f32 %v96_v31, %v91_v32 }
 0x136   :  { %v92_v36 = vmul.f32 %v90_v28, %v86_v34  ;;  %3898 = vmatprep.mubr.msk.f32.mxu0 %vm59_vm0, %v97_v35  ;;  %v317_v28 = vrot.slane %v4382_v26, %v4431_v22  ;;  %v323_v34 = vrot.slane %v4382_v26, %v4436_v29  ;;  %v44_v26 = vld [vmem:[%s4957_s1] sm:$0xf] }
 0x138   :  { %v98_v37 = vadd.f32 %v96_v31, %v92_v36 }
 0x13a   :  { %3899 = vmatmul.mubr.msk.f32.vlgmr.msra.gmra.mxu0 %vm59_vm0, %v98_v37 }
 0x1fa   :  { %v3900_v41 = vpop.f32.mrf.mxu0 }
 0x1fb   :  { %v181_v42 = vadd.f32 %v3900_v41, %v102_v40  ;;  %v4262_v41 = vmov 0.0  }
 0x1fc   :  { %v175_v43 = vpop.f32.mrf.mxu0  ;;  %3913 = vmatprep.subr.mxu0 %v4262_v41  ;;  %3915 = vmatprep.mubr.msk.f32.mxu0 %vm4264_vm3, %v4262_v41 }
 0x1fd   :  { %v185_v44 = vmul.f32 0.5, %v181_v42  ;;  %v176_v45 = vadd.f32 %v175_v43, %v102_v40  ;;  %3914 = vmatpush3.msk.msra.mxu0 %vm205_vm1, %v44_v26  ;;  %v49_v26 = vld [vmem:[%s4957_s1 + $0x14] sm:$0xf] }
 0x1fe   :  { %3923 = vmatprep.subr.mxu0 %v4262_v41 }
 0x1ff   :  { %4132 = vtanh.f32 %v185_v44  ;;  %v184_v46 = vmul.f32 0.5, %v176_v45  ;;  %v4266_v44 = vmov 1983009808  }
 0x201   :  { %4134 = vtanh.f32 %v184_v46 }
 0x20c   :  { %v4133_v47 = vpop.eup %4132 }
 0x20d   :  { %v189_v48 = vadd.f32 1.0, %v4133_v47 }
 0x20e   :  { %v4135_v49 = vpop.eup %4134 }
 0x20f   :  { %v188_v50 = vadd.f32 1.0, %v4135_v49  ;;  %v191_v51 = vmul.f32 0.5, %v189_v48  ;;  %v4267_v49 = vmov 1934713408  }
 0x211   :  { %v190_v52 = vmul.f32 0.5, %v188_v50  ;;  %v193_v54 = vmul.f32 %v191_v51, %v181_v42  ;;  %v45_v42 = vld [vmem:[%s4957_s1 + $0x4] sm:$0xf]  ;;  %v496_v50 = vunpack.c.l.s4 %v4267_v49  ;;  %v50_v49 = vld [vmem:[%s4957_s1 + $0x18] sm:$0xf] }
 0x213   :  { %v192_v53 = vmul.f32 %v190_v52, %v176_v45  ;;  %v432_v45 = vunpack.c.l.s4 %v4266_v44 }
 0x215   :  { %3903 = vmatprep.mubr.msk.f32.mxu1 %vm198_vm2, %v192_v53  ;;  %v433_v48 = vunpack.c.0.s8 %v432_v45 }
 0x216   :  { %3904 = vmatmul.mubr.msk.f32.vlgmr.msra.gmra.mxu1 %vm198_vm2, %v193_v54 }
 0x217   :  { %3907 = vmatpush3.msra.mxu1 %v327_v13  ;;  %v4490_v54 = vsub.s32 %v433_v48, %v4374_v24 }
 0x218   :  { %3908 = vmatprep.subr.mxu1 %v326_v15 }
 0x219   :  { %3909 = vmatpush3.msra.mxu1 %v326_v15 }
 0x21a   :  { %3918 = vmatprep.subr.mxu1 %v4262_v41 }
 0x2d6   :  { %v3905_v57 = vpop.f32.mrf.mxu1 }
 0x2d7   :  { %v281_v58 = vadd.f32 %v3905_v57, %v197_v56  ;;  %v497_v57 = vunpack.c.0.s8 %v496_v50  ;;  %v51_v50 = vld [vmem:[%s4957_s1 + $0x1c] sm:$0xf] }
 0x2d8   :  { %v275_v59 = vpop.f32.mrf.mxu1 }
 0x2d9   :  { %v285_v60 = vmul.f32 0.5, %v281_v58  ;;  %v276_v61 = vadd.f32 %v275_v59, %v197_v56 }
 0x2db   :  { %v4411_v62 = vadd.f32 %v285_v60, %v4353_v1  ;;  %v284_v63 = vmul.f32 0.5, %v276_v61 }
 0x2dd   :  { %v4414_v2 = vadd.f32 %v284_v63, %v4348_v0  ;;  %v291_v3 = vsel %vm59_vm0, %v4411_v62, 0.0 }
 0x2de   :  { %292 = vadd.xlane.f32.xlu1 %v291_v3 }
 0x2df   :  { %v288_v4 = vsel %vm59_vm0, %v4414_v2, 0.0 }
 0x2e0   :  { %289 = vadd.xlane.f32.xlu0 %v288_v4  ;;  %v4508_v4 = vsub.s32 %v497_v57, %v4374_v24 }
 0x367   :  { %v293_v5 = vpop.xlane.xlu1 %292 }
 0x368   :  { %v295_v6 = vmul.f32 0.0625, %v293_v5 }
 0x369   :  { %v290_v7 = vpop.xlane.xlu0 %289 }
 0x36a   :  { %v297_v8 = vsub.f32 %v4411_v62, %v295_v6  ;;  %v294_v9 = vmul.f32 0.0625, %v290_v7 }
 0x36c   :  { %v296_v1 = vsub.f32 %v4414_v2, %v294_v9  ;;  %v299_v10 = vmul.f32 %v297_v8, %v297_v8 }
 0x36e   :  { %v303_v0 = vsel %vm59_vm0, %v299_v10, 0.0  ;;  %v298_v11 = vmul.f32 %v296_v1, %v296_v1 }
 0x36f   :  { %304 = vadd.xlane.f32.xlu1 %v303_v0 }
 0x370   :  { %v300_v12 = vsel %vm59_vm0, %v298_v11, 0.0 }
 0x371   :  { %301 = vadd.xlane.f32.xlu0 %v300_v12 }
 0x3f8   :  { %v305_v16 = vpop.xlane.xlu1 %304 }
 0x3f9   :  { %v307_v17 = vmul.f32 0.0625, %v305_v16 }
 0x3fa   :  { %v302_v18 = vpop.xlane.xlu0 %301 }
 0x3fb   :  { %v309_v19 = vadd.f32 1e-05, %v307_v17  ;;  %v306_v20 = vmul.f32 0.0625, %v302_v18 }
 0x3fd   :  { %4136 = vrsqrt.f32 %v309_v19  ;;  %v308_v21 = vadd.f32 1e-05, %v306_v20 }
 0x3ff   :  { %4138 = vrsqrt.f32 %v308_v21 }
 0x40a   :  { %v4137_v23 = vpop.eup %4136 }
 0x40b   :  { %v313_v30 = vmul.f32 %v4137_v23, %v297_v8  ;;  %v46_v23 = vld [vmem:[%s4957_s1 + $0x8] sm:$0xf] }
 0x40c   :  { %v4139_v31 = vpop.eup %4138 }
 0x40d   :  { %v312_v32 = vmul.f32 %v4139_v31, %v296_v1  ;;  %v319_v33 = vmul.f32 %v317_v28, %v313_v30  ;;  %v47_v30 = vld [vmem:[%s4957_s1 + $0xc] sm:$0xf] }
 0x40f   :  { %v318_v35 = vmul.f32 %v317_v28, %v312_v32  ;;  %v325_v37 = vadd.f32 %v323_v34, %v319_v33 }
 0x411   :  { %v324_v36 = vadd.f32 %v323_v34, %v318_v35 }
 0x413   :  { %3910 = vmatprep.mubr.msk.f32.mxu1 %vm59_vm0, %v324_v36  ;;  %v48_v36 = vld [vmem:[%s4957_s1 + $0x10] sm:$0xf]  ;;  %s4268_s1 = smov 96  }
 0x414   :  { %3911 = vmatmul.mubr.msk.f32.vlgmr.msra.gmra.mxu1 %vm59_vm0, %v325_v37 }
 0x415   :  { %3919 = vmatpush3.msk.msra.mxu1 %vm205_vm1, %v45_v42  ;;  %3920 = vmatprep.mubr.msk.f32.mxu1 %vm4264_vm3, %v4262_v41 }
 0x416   :  { %3928 = vmatprep.subr.mxu1 %v4262_v41 }
 0x4d4   :  { %v4442_v38 = vpop.f32.mrf.mxu1 }
 0x4d5   :  { %413 = vrot.lane.b32.xlu1 %v4442_v38, %s4260_s5 }
 0x4d6   :  { %v4446_v40 = vpop.f32.mrf.mxu1 }
 0x4d7   :  { %411 = vrot.lane.b32.xlu0 %v4446_v40, %s4260_s5 }
 0x4d9   :  { %417 = vrot.lane.b32.xlu1 %v4446_v40, %s4261_s22 }
 0x4db   :  { %423 = vrot.lane.b32.xlu0 %v4446_v40, %s4263_s0 }
 0x4dd   :  { %419 = vrot.lane.b32.xlu1 %v4442_v38, %s4261_s22  ;;  %s4269_s22 = smov 4  }
 0x4df   :  { %1309 = vrot.lane.b32.xlu0 %v4446_v40, %s4265_s25 }
 0x4e1   :  { %425 = vrot.lane.b32.xlu1 %v4442_v38, %s4263_s0 }
 0x4e5   :  { %1385 = vrot.lane.b32.xlu1 %v4442_v38, %s4265_s25 }
 0x547   :  { %v4474_v43 = vpop.permute.xlu1 %413 }
 0x548   :  { %1537 = vrot.lane.b32.xlu1 %v4474_v43, %s4265_s25  ;;  %v445_v56 = vcombine.low %v4442_v38, %v4474_v43  ;;  %v446_v1 = vcombine.high %v4442_v38, %v4474_v43 }
 0x549   :  { %v4477_v46 = vpop.permute.xlu0 %411 }
 0x54a   :  { %1461 = vrot.lane.b32.xlu0 %v4477_v46, %s4265_s25  ;;  %v429_v51 = vcombine.low %v4446_v40, %v4477_v46  ;;  %v453_v61 = vrot.slane %v445_v56, %v4490_v54  ;;  %v430_v5 = vcombine.high %v4446_v40, %v4477_v46  ;;  %v460_v18 = vrot.slane %v446_v1, %v4490_v54 }
 0x54b   :  { %v4480_v47 = vpop.permute.xlu1 %417 }
 0x54c   :  { %v437_v58 = vrot.slane %v429_v51, %v4490_v54  ;;  %v444_v12 = vrot.slane %v430_v5, %v4490_v54 }
 0x54d   :  { %v4485_v52 = vpop.permute.xlu0 %423 }
 0x54e   :  { %1613 = vrot.lane.b32.xlu0 %v4480_v47, %s4265_s25  ;;  %v461_v59 = vcombine.low %v4480_v47, %v4485_v52  ;;  %v493_v6 = vcombine.low %v437_v58, %v453_v61  ;;  %v462_v7 = vcombine.high %v4480_v47, %v4485_v52  ;;  %v494_v13 = vcombine.high %v437_v58, %v453_v61 }
 0x54f   :  { %v4487_v53 = vpop.permute.xlu1 %419  ;;  %v509_v31 = vcombine.low %v444_v12, %v460_v18  ;;  %v510_v42 = vcombine.high %v444_v12, %v460_v18 }
 0x550   :  { %1689 = vrot.lane.b32.xlu1 %v4487_v53, %s4265_s25  ;;  %v469_v8 = vrot.slane %v461_v59, %v4490_v54  ;;  %v476_v15 = vrot.slane %v462_v7, %v4490_v54  ;;  %v501_v16 = vrot.slane %v493_v6, %v4508_v4  ;;  %v508_v32 = vrot.slane %v494_v13, %v4508_v4 }
 0x551   :  { %v517_v44 = vrot.slane %v509_v31, %v4508_v4  ;;  %v524_v56 = vrot.slane %v510_v42, %v4508_v4  ;;  %v1310_v59 = vpop.permute.xlu0 %1309 }
 0x552   :  { %1765 = vrot.lane.b32.xlu0 %v4485_v52, %s4265_s25 }
 0x553   :  { %v4499_v60 = vpop.permute.xlu1 %425 }
 0x554   :  { %v477_v63 = vcombine.low %v4487_v53, %v4499_v60  ;;  %v478_v3 = vcombine.high %v4487_v53, %v4499_v60  ;;  %1841 = vrot.lane.b32.xlu1 %v4499_v60, %s4265_s25  ;;  %s4270_s25 = smov 8  }
 0x556   :  { %v485_v9 = vrot.slane %v477_v63, %v4490_v54  ;;  %v492_v10 = vrot.slane %v478_v3, %v4490_v54 }
 0x557   :  { %v1386_v61 = vpop.permute.xlu1 %1385 }
 0x558   :  { %v525_v0 = vcombine.low %v469_v8, %v485_v9  ;;  %v526_v11 = vcombine.high %v469_v8, %v485_v9  ;;  %v541_v19 = vcombine.low %v476_v15, %v492_v10  ;;  %v542_v33 = vcombine.high %v476_v15, %v492_v10 }
 0x55a   :  { %v533_v17 = vrot.slane %v525_v0, %v4508_v4  ;;  %v540_v28 = vrot.slane %v526_v11, %v4508_v4  ;;  %v549_v37 = vrot.slane %v541_v19, %v4508_v4  ;;  %v556_v51 = vrot.slane %v542_v33, %v4508_v4 }
 0x55c   :  { %v557_v20 = vcombine.low %v501_v16, %v533_v17  ;;  %v558_v21 = vcombine.high %v501_v16, %v533_v17  ;;  %v559_v34 = vcombine.low %v508_v32, %v540_v28  ;;  %v560_v35 = vcombine.high %v508_v32, %v540_v28 }
 0x55d   :  { %v561_v45 = vcombine.low %v517_v44, %v549_v37  ;;  %v562_v48 = vcombine.high %v517_v44, %v549_v37  ;;  %v563_v57 = vcombine.low %v524_v56, %v556_v51  ;;  %v564_v58 = vcombine.high %v524_v56, %v556_v51 }
 0x55e   :  { %3916 = vmatmul.mubr.msk.f32.vlgmr.msra.gmra.mxu0 %vm198_vm2, %v557_v20  ;;  %3921 = vmatmul.mubr.msk.f32.vlgmr.msra.gmra.mxu1 %vm198_vm2, %v558_v21 }
 0x55f   :  { %3924 = vmatpush3.msk.msra.mxu0 %vm205_vm1, %v46_v23  ;;  %3925 = vmatprep.mubr.msk.f32.mxu0 %vm4264_vm3, %v4262_v41 }
 0x560   :  { %3929 = vmatpush3.msk.msra.mxu1 %vm205_vm1, %v47_v30  ;;  %3930 = vmatprep.mubr.msk.f32.mxu1 %vm4264_vm3, %v4262_v41 }
 0x561   :  { %3933 = vmatprep.subr.mxu0 %v4262_v41  ;;  %3938 = vmatprep.subr.mxu1 %v4262_v41 }
 0x562   :  { %3926 = vmatmul.mubr.msk.f32.vlgmr.msra.gmra.mxu0 %vm198_vm2, %v559_v34  ;;  %3931 = vmatmul.mubr.msk.f32.vlgmr.msra.gmra.mxu1 %vm198_vm2, %v560_v35 }
 0x563   :  { %3934 = vmatpush3.msk.msra.mxu0 %vm205_vm1, %v48_v36  ;;  %3935 = vmatprep.mubr.msk.f32.mxu0 %vm4264_vm3, %v4262_v41 }
 0x564   :  { %3939 = vmatpush3.msk.msra.mxu1 %vm205_vm1, %v49_v26  ;;  %3940 = vmatprep.mubr.msk.f32.mxu1 %vm4264_vm3, %v4262_v41 }
 0x565   :  { %3943 = vmatprep.subr.mxu0 %v4262_v41  ;;  %3948 = vmatprep.subr.mxu1 %v4262_v41 }
 0x566   :  { %3936 = vmatmul.mubr.msk.f32.vlgmr.msra.gmra.mxu0 %vm198_vm2, %v561_v45  ;;  %3941 = vmatmul.mubr.msk.f32.vlgmr.msra.gmra.mxu1 %vm198_vm2, %v562_v48 }
 0x567   :  { %3944 = vmatpush3.msk.msra.mxu0 %vm205_vm1, %v50_v49  ;;  %3949 = vmatpush3.msk.msra.mxu1 %vm205_vm1, %v51_v50 }
 0x568   :  { %3945 = vmatprep.mubr.msk.f32.mxu0 %vm4264_vm3, %v4262_v41  ;;  %3950 = vmatprep.mubr.msk.f32.mxu1 %vm4264_vm3, %v4262_v41 }
 0x569   :  { %3953 = vmatprep.subr.mxu0 %v4262_v41  ;;  %3958 = vmatprep.subr.mxu1 %v4262_v41 }
 0x56a   :  { %3946 = vmatmul.mubr.msk.f32.vlgmr.msra.gmra.mxu0 %vm198_vm2, %v563_v57  ;;  %3951 = vmatmul.mubr.msk.f32.vlgmr.msra.gmra.mxu1 %vm198_vm2, %v564_v58 }
 0x56b   :  { %3954 = vmatpush3.xpose.msk.msra.mxu0 %vm198_vm2, %v1310_v59  ;;  %3959 = vmatpush3.xpose.msk.msra.mxu1 %vm198_vm2, %v1386_v61 }
 0x56c   :  { %3955 = vmatprep.mubr.msk.f32.mxu0 %vm4264_vm3, %v4262_v41  ;;  %3960 = vmatprep.mubr.msk.f32.mxu1 %vm4264_vm3, %v4262_v41 }
 0x56d   :  { %3968 = vmatprep.subr.mxu1 %v4262_v41  ;;  %3963 = vmatprep.subr.mxu0 %v4262_v41 }
 0x56e   :  { %3956 = vmatmul.mubr.msk.f32.vlgmr.msra.gmra.mxu0 %vm198_vm2, %v4446_v40  ;;  %3961 = vmatmul.mubr.msk.f32.vlgmr.msra.gmra.mxu1 %vm198_vm2, %v4442_v38 }
 0x56f   :  { %3970 = vmatprep.mubr.msk.f32.mxu1 %vm4264_vm3, %v4262_v41  ;;  %3965 = vmatprep.mubr.msk.f32.mxu0 %vm4264_vm3, %v4262_v41 }
 0x5ba   :  { %v1538_v63 = vpop.permute.xlu1 %1537 }
 0x5bb   :  { %3969 = vmatpush3.xpose.msk.msra.mxu1 %vm198_vm2, %v1538_v63 }
 0x5bc   :  { %v1462_v3 = vpop.permute.xlu0 %1461  ;;  %3978 = vmatprep.subr.mxu1 %v4262_v41 }
 0x5bd   :  { %3964 = vmatpush3.xpose.msk.msra.mxu0 %vm198_vm2, %v1462_v3 }
 0x5be   :  { %3971 = vmatmul.mubr.msk.f32.vlgmr.msra.gmra.mxu1 %vm198_vm2, %v4474_v43  ;;  %3973 = vmatprep.subr.mxu0 %v4262_v41 }
 0x5bf   :  { %3980 = vmatprep.mubr.msk.f32.mxu1 %vm4264_vm3, %v4262_v41 }
 0x5c0   :  { %3966 = vmatmul.mubr.msk.f32.vlgmr.msra.gmra.mxu0 %vm198_vm2, %v4477_v46  ;;  %v1614_v5 = vpop.permute.xlu0 %1613 }
 0x5c1   :  { %3974 = vmatpush3.xpose.msk.msra.mxu0 %vm198_vm2, %v1614_v5  ;;  %3975 = vmatprep.mubr.msk.f32.mxu0 %vm4264_vm3, %v4262_v41 }
 0x5c2   :  { %v1690_v6 = vpop.permute.xlu1 %1689  ;;  %3983 = vmatprep.subr.mxu0 %v4262_v41 }
 0x5c3   :  { %3979 = vmatpush3.xpose.msk.msra.mxu1 %vm198_vm2, %v1690_v6 }
 0x5c4   :  { %3976 = vmatmul.mubr.msk.f32.vlgmr.msra.gmra.mxu0 %vm198_vm2, %v4480_v47  ;;  %v1766_v7 = vpop.permute.xlu0 %1765  ;;  %3988 = vmatprep.subr.mxu1 %v4262_v41 }
 0x5c5   :  { %3984 = vmatpush3.xpose.msk.msra.mxu0 %vm198_vm2, %v1766_v7  ;;  %3985 = vmatprep.mubr.msk.f32.mxu0 %vm4264_vm3, %v4262_v41 }
 0x5c6   :  { %v1842_v8 = vpop.permute.xlu1 %1841  ;;  %3981 = vmatmul.mubr.msk.f32.vlgmr.msra.gmra.mxu1 %vm198_vm2, %v4487_v53  ;;  %3993 = vmatprep.subr.mxu0 %v4262_v41 }
 0x5c7   :  { %3989 = vmatpush3.xpose.msk.msra.mxu1 %vm198_vm2, %v1842_v8  ;;  %3990 = vmatprep.mubr.msk.f32.mxu1 %vm4264_vm3, %v4262_v41 }
 0x5c8   :  { %3986 = vmatmul.mubr.msk.f32.vlgmr.msra.gmra.mxu0 %vm198_vm2, %v4485_v52  ;;  %3998 = vmatprep.subr.mxu1 %v4262_v41 }
 0x5c9   :  { %3995 = vmatprep.mubr.msk.f32.mxu0 %vm4264_vm3, %v4262_v41 }
 0x5ca   :  { %3991 = vmatmul.mubr.msk.f32.vlgmr.msra.gmra.mxu1 %vm198_vm2, %v4499_v60 }
 0x5cb   :  { %4000 = vmatprep.mubr.msk.f32.mxu1 %vm4264_vm3, %v4262_v41 }
 0x61e   :  { %v637_v9 = vpop.f32.mrf.mxu0  ;;  %v713_v1 = vpop.f32.mrf.mxu1 }
 0x620   :  { %v3917_v10 = vpop.f32.mrf.mxu0  ;;  %v3922_v0 = vpop.f32.mrf.mxu1 }
 0x622   :  { %v789_v11 = vpop.f32.mrf.mxu0  ;;  %v865_v12 = vpop.f32.mrf.mxu1 }
 0x623   :  { %v1173_v13 = vcombine.low %v637_v9, %v789_v11  ;;  %v1174_v15 = vcombine.high %v637_v9, %v789_v11  ;;  %v1189_v16 = vcombine.low %v713_v1, %v865_v12  ;;  %v1190_v17 = vcombine.high %v713_v1, %v865_v12 }
 0x624   :  { %v3927_v18 = vpop.f32.mrf.mxu0  ;;  %v3932_v19 = vpop.f32.mrf.mxu1 }
 0x625   :  { %v1181_v20 = vrot.slane %v1173_v13, %v4490_v54  ;;  %v1188_v21 = vrot.slane %v1174_v15, %v4490_v54  ;;  %v1197_v23 = vrot.slane %v1189_v16, %v4490_v54  ;;  %v1204_v28 = vrot.slane %v1190_v17, %v4490_v54 }
 0x626   :  { %v941_v30 = vpop.f32.mrf.mxu0  ;;  %v1017_v31 = vpop.f32.mrf.mxu1 }
 0x627   :  { %v1238_v32 = vcombine.high %v1181_v20, %v1197_v23  ;;  %v1253_v33 = vcombine.low %v1188_v21, %v1204_v28  ;;  %v1254_v34 = vcombine.high %v1188_v21, %v1204_v28  ;;  %v1237_v49 = vcombine.low %v1181_v20, %v1197_v23 }
 0x628   :  { %v3937_v35 = vpop.f32.mrf.mxu0  ;;  %v3942_v36 = vpop.f32.mrf.mxu1 }
 0x629   :  { %v1245_v8 = vrot.slane %v1237_v49, %v4508_v4  ;;  %v1252_v10 = vrot.slane %v1238_v32, %v4508_v4  ;;  %v1261_v15 = vrot.slane %v1253_v33, %v4508_v4  ;;  %v1268_v16 = vrot.slane %v1254_v34, %v4508_v4 }
 0x62a   :  { %v1093_v37 = vpop.f32.mrf.mxu0  ;;  %v1169_v26 = vpop.f32.mrf.mxu1 }
 0x62b   :  { %v1205_v42 = vcombine.low %v941_v30, %v1093_v37  ;;  %v1206_v44 = vcombine.high %v941_v30, %v1093_v37  ;;  %v1221_v45 = vcombine.low %v1017_v31, %v1169_v26  ;;  %v1222_v48 = vcombine.high %v1017_v31, %v1169_v26 }
 0x62c   :  { %v3947_v50 = vpop.f32.mrf.mxu0  ;;  %v3952_v51 = vpop.f32.mrf.mxu1 }
 0x62d   :  { %v1213_v56 = vrot.slane %v1205_v42, %v4490_v54  ;;  %v1220_v57 = vrot.slane %v1206_v44, %v4490_v54  ;;  %v1229_v58 = vrot.slane %v1221_v45, %v4490_v54  ;;  %v1236_v59 = vrot.slane %v1222_v48, %v4490_v54 }
 0x62e   :  { %v1381_v61 = vpop.f32.mrf.mxu0  ;;  %v1457_v63 = vpop.f32.mrf.mxu1 }
 0x62f   :  { %v1269_v3 = vcombine.low %v1213_v56, %v1229_v58  ;;  %v1270_v5 = vcombine.high %v1213_v56, %v1229_v58  ;;  %v1285_v6 = vcombine.low %v1220_v57, %v1236_v59  ;;  %v1286_v7 = vcombine.high %v1220_v57, %v1236_v59 }
 0x630   :  { %v3957_v9 = vpop.f32.mrf.mxu0  ;;  %v3962_v1 = vpop.f32.mrf.mxu1 }
 0x631   :  { %v1277_v0 = vrot.slane %v1269_v3, %v4508_v4  ;;  %v1284_v11 = vrot.slane %v1270_v5, %v4508_v4  ;;  %v1293_v12 = vrot.slane %v1285_v6, %v4508_v4  ;;  %v1300_v13 = vrot.slane %v1286_v7, %v4508_v4 }
 0x633   :  { %v1301_v17 = vcombine.low %v1245_v8, %v1277_v0  ;;  %v1302_v18 = vcombine.high %v1245_v8, %v1277_v0  ;;  %v1304_v19 = vcombine.high %v1252_v10, %v1284_v11  ;;  %v1303_v20 = vcombine.low %v1252_v10, %v1284_v11 }
 0x634   :  { %v1305_v21 = vcombine.low %v1261_v15, %v1293_v12  ;;  %v1306_v23 = vcombine.high %v1261_v15, %v1293_v12  ;;  %v1307_v28 = vcombine.low %v1268_v16, %v1300_v13  ;;  %v1308_v30 = vcombine.high %v1268_v16, %v1300_v13 }
 0x635   :  { %v1382_v31 = vadd.f32 %v1381_v61, %v1301_v17  ;;  %v1458_v32 = vadd.f32 %v1457_v63, %v1302_v18 }
 0x637   :  { %v1921_v35 = vsel %vm1917_vm4, %v1458_v32, -inf  ;;  %v1918_v36 = vsel %vm1917_vm4, %v1382_v31, -inf }
 0x638   :  { %1922 = vmax.xlane.f32.xlu1 %v1921_v35  ;;  %1919 = vmax.xlane.f32.xlu0 %v1918_v36 }
 0x67e   :  { %v1609_v37 = vpop.f32.mrf.mxu1 }
 0x67f   :  { %v1610_v33 = vadd.f32 %v1609_v37, %v1304_v19 }
 0x680   :  { %v1533_v26 = vpop.f32.mrf.mxu0  ;;  %v3972_v34 = vpop.f32.mrf.mxu1 }
 0x681   :  { %v1534_v42 = vadd.f32 %v1533_v26, %v1303_v20  ;;  %v1927_v44 = vsel %vm1917_vm4, %v1610_v33, -inf }
 0x682   :  { %1928 = vmax.xlane.f32.xlu0 %v1927_v44  ;;  %v3967_v45 = vpop.f32.mrf.mxu0 }
 0x683   :  { %v1924_v50 = vsel %vm1917_vm4, %v1534_v42, -inf }
 0x684   :  { %v1685_v48 = vpop.f32.mrf.mxu0 }
 0x685   :  { %v1686_v49 = vadd.f32 %v1685_v48, %v1305_v21 }
 0x686   :  { %v1761_v51 = vpop.f32.mrf.mxu1  ;;  %1925 = vmax.xlane.f32.xlu0 %v1924_v50  ;;  %v3977_v56 = vpop.f32.mrf.mxu0 }
 0x687   :  { %v1762_v57 = vadd.f32 %v1761_v51, %v1306_v23  ;;  %v1930_v3 = vsel %vm1917_vm4, %v1686_v49, -inf }
 0x688   :  { %v3982_v58 = vpop.f32.mrf.mxu1  ;;  %v1837_v59 = vpop.f32.mrf.mxu0 }
 0x689   :  { %v1838_v61 = vadd.f32 %v1837_v59, %v1307_v28  ;;  %v1933_v63 = vsel %vm1917_vm4, %v1762_v57, -inf }
 0x68a   :  { %v1913_v5 = vpop.f32.mrf.mxu1  ;;  %1934 = vmax.xlane.f32.xlu1 %v1933_v63  ;;  %1931 = vmax.xlane.f32.xlu0 %v1930_v3  ;;  %v3987_v6 = vpop.f32.mrf.mxu0 }
 0x68b   :  { %v1914_v7 = vadd.f32 %v1913_v5, %v1308_v30  ;;  %v1936_v1 = vsel %vm1917_vm4, %v1838_v61, -inf }
 0x68c   :  { %v3992_v8 = vpop.f32.mrf.mxu1 }
 0x68d   :  { %v1939_v9 = vsel %vm1917_vm4, %v1914_v7, -inf }
 0x68e   :  { %1940 = vmax.xlane.f32.xlu1 %v1939_v9  ;;  %1937 = vmax.xlane.f32.xlu0 %v1936_v1 }
 0x69f   :  { %2082 = vrot.lane.b32.xlu1 %v4442_v38, %s4268_s1 }
 0x6a3   :  { %2158 = vrot.lane.b32.xlu1 %v4477_v46, %s4268_s1 }
 0x6a4   :  { %2006 = vrot.lane.b32.xlu0 %v4446_v40, %s4268_s1 }
 0x6a7   :  { %2234 = vrot.lane.b32.xlu1 %v4474_v43, %s4268_s1 }
 0x6a8   :  { %2310 = vrot.lane.b32.xlu0 %v4480_v47, %s4268_s1 }
 0x6ab   :  { %2386 = vrot.lane.b32.xlu1 %v4487_v53, %s4268_s1 }
 0x6c1   :  { %v1923_v10 = vpop.xlane.xlu1 %1922  ;;  %v1920_v0 = vpop.xlane.xlu0 %1919 }
 0x6c2   :  { %v1943_v11 = vsub.f32 %v1458_v32, %v1923_v10  ;;  %v1942_v12 = vsub.f32 %v1382_v31, %v1920_v0 }
 0x6c4   :  { %v1952_v38 = vmul.f32 1.442695, %v1943_v11  ;;  %v1950_v13 = vmul.f32 1.442695, %v1942_v12 }
 0x6c6   :  { %4140 = vpow2.f32 %v1952_v38 }
 0x6c7   :  { %4142 = vpow2.f32 %v1950_v13 }
 0x6d3   :  { %v4668_v46 = vpop.eup %4140 }
 0x6d4   :  { %v4670_v40 = vpop.eup %4142  ;;  %v1969_v43 = vsel %vm1917_vm4, %v4668_v46, 0.0 }
 0x6d5   :  { %1970 = vadd.xlane.f32.xlu1 %v1969_v43  ;;  %v1966_v47 = vsel %vm1917_vm4, %v4670_v40, 0.0 }
 0x6d6   :  { %1967 = vadd.xlane.f32.xlu0 %v1966_v47 }
 0x70b   :  { %v1929_v53 = vpop.xlane.xlu0 %1928 }
 0x70c   :  { %v1945_v15 = vsub.f32 %v1610_v33, %v1929_v53 }
 0x70e   :  { %v1956_v16 = vmul.f32 1.442695, %v1945_v15 }
 0x70f   :  { %v1926_v17 = vpop.xlane.xlu0 %1925 }
 0x710   :  { %4144 = vpow2.f32 %v1956_v16  ;;  %v1944_v18 = vsub.f32 %v1534_v42, %v1926_v17 }
 0x712   :  { %v1954_v19 = vmul.f32 1.442695, %v1944_v18 }
 0x713   :  { %v1935_v20 = vpop.xlane.xlu1 %1934  ;;  %v1932_v21 = vpop.xlane.xlu0 %1931 }
 0x714   :  { %4146 = vpow2.f32 %v1954_v19  ;;  %v1947_v23 = vsub.f32 %v1762_v57, %v1935_v20  ;;  %v1946_v28 = vsub.f32 %v1686_v49, %v1932_v21 }
 0x716   :  { %v1960_v30 = vmul.f32 1.442695, %v1947_v23  ;;  %v1958_v31 = vmul.f32 1.442695, %v1946_v28 }
 0x717   :  { %v1941_v32 = vpop.xlane.xlu1 %1940  ;;  %v1938_v35 = vpop.xlane.xlu0 %1937 }
 0x718   :  { %4148 = vpow2.f32 %v1960_v30  ;;  %v1949_v36 = vsub.f32 %v1914_v7, %v1941_v32  ;;  %v1948_v37 = vsub.f32 %v1838_v61, %v1938_v35 }
 0x719   :  { %4150 = vpow2.f32 %v1958_v31 }
 0x71a   :  { %v1964_v26 = vmul.f32 1.442695, %v1949_v36  ;;  %v1962_v33 = vmul.f32 1.442695, %v1948_v37  ;;  %v2646_v37 = vld [vmem:[%s4962_s6 + $0x8] sm:$0xff] }
 0x71b   :  { %v2083_v34 = vpop.permute.xlu1 %2082  ;;  %v2007_v44 = vpop.permute.xlu0 %2006 }
 0x71c   :  { %4152 = vpow2.f32 %v1964_v26  ;;  %3994 = vmatpush3.msra.mxu0 %v2007_v44  ;;  %3999 = vmatpush3.msra.mxu1 %v2083_v34 }
 0x71d   :  { %v4145_v42 = vpop.eup %4144  ;;  %4154 = vpow2.f32 %v1962_v33  ;;  %4003 = vmatprep.subr.mxu0 %v4262_v41  ;;  %4008 = vmatprep.subr.mxu1 %v4262_v41  ;;  %v2645_v33 = vld [vmem:[%s4962_s6] sm:$0xff] }
 0x71e   :  { %v1975_v45 = vsel %vm1917_vm4, %v4145_v42, 0.0 }
 0x71f   :  { %1976 = vadd.xlane.f32.xlu1 %v1975_v45  ;;  %v2159_v3 = vpop.permute.xlu1 %2158  ;;  %v2311_v7 = vpop.permute.xlu0 %2310 }
 0x721   :  { %v4147_v48 = vpop.eup %4146 }
 0x722   :  { %v1972_v49 = vsel %vm1917_vm4, %v4147_v48, 0.0 }
 0x723   :  { %1973 = vadd.xlane.f32.xlu0 %v1972_v49  ;;  %v2235_v5 = vpop.permute.xlu1 %2234 }
 0x725   :  { %v4149_v50 = vpop.eup %4148 }
 0x726   :  { %v4151_v51 = vpop.eup %4150  ;;  %v1981_v56 = vsel %vm1917_vm4, %v4149_v50, 0.0 }
 0x727   :  { %1982 = vadd.xlane.f32.xlu1 %v1981_v56  ;;  %v1978_v57 = vsel %vm1917_vm4, %v4151_v51, 0.0  ;;  %v2387_v6 = vpop.permute.xlu1 %2386 }
 0x728   :  { %1979 = vadd.xlane.f32.xlu0 %v1978_v57 }
 0x729   :  { %v4682_v58 = vpop.eup %4152 }
 0x72a   :  { %v4684_v59 = vpop.eup %4154  ;;  %v1987_v61 = vsel %vm1917_vm4, %v4682_v58, 0.0 }
 0x72b   :  { %1988 = vadd.xlane.f32.xlu1 %v1987_v61  ;;  %v1984_v63 = vsel %vm1917_vm4, %v4684_v59, 0.0 }
 0x72c   :  { %1985 = vadd.xlane.f32.xlu0 %v1984_v63 }
 0x73c   :  { %2538 = vrot.lane.b32.xlu1 %v4499_v60, %s4268_s1 }
 0x742   :  { %2462 = vrot.lane.b32.xlu0 %v4485_v52, %s4268_s1 }
 0x75e   :  { %v1971_v8 = vpop.xlane.xlu1 %1970 }
 0x75f   :  { %4156 = vrcp.f32 %v1971_v8  ;;  %v1968_v9 = vpop.xlane.xlu0 %1967 }
 0x760   :  { %4158 = vrcp.f32 %v1968_v9 }
 0x76c   :  { %v4157_v1 = vpop.eup %4156 }
 0x76d   :  { %v4159_v10 = vpop.eup %4158  ;;  %v1993_v0 = vmul.f32 %v4157_v1, %v4668_v46 }
 0x76e   :  { %v1991_v11 = vmul.f32 %v4159_v10, %v4670_v40 }
 0x76f   :  { %4001 = vmatmul.mubr.msk.f32.vlgmr.msra.gmra.mxu1 %vm1917_vm4, %v1993_v0 }
 0x770   :  { %3996 = vmatmul.mubr.msk.f32.vlgmr.msra.gmra.mxu0 %vm1917_vm4, %v1991_v11  ;;  %4009 = vmatpush3.msra.mxu1 %v2235_v5  ;;  %v4735_v11 = vsub.s32 6, %v4374_v24 }
 0x771   :  { %4004 = vmatpush3.msra.mxu0 %v2159_v3  ;;  %4010 = vmatprep.mubr.msk.f32.mxu1 %vm4264_vm3, %v4262_v41 }
 0x772   :  { %4018 = vmatprep.subr.mxu1 %v4262_v41  ;;  %4005 = vmatprep.mubr.msk.f32.mxu0 %vm4264_vm3, %v4262_v41 }
 0x773   :  { %4013 = vmatprep.subr.mxu0 %v4262_v41 }
 0x7a8   :  { %v1977_v52 = vpop.xlane.xlu1 %1976 }
 0x7a9   :  { %4160 = vrcp.f32 %v1977_v52  ;;  %v4196_v52 = vld [vmem:[%s4958_s2] sm:$0xff] }
 0x7ac   :  { %v1974_v60 = vpop.xlane.xlu0 %1973 }
 0x7ad   :  { %4162 = vrcp.f32 %v1974_v60  ;;  %v2650_v60 = vrot.slane %v4196_v52, %v4735_v11 }
 0x7b0   :  { %v1983_v12 = vpop.xlane.xlu1 %1982 }
 0x7b1   :  { %4164 = vrcp.f32 %v1983_v12  ;;  %v1980_v38 = vpop.xlane.xlu0 %1979 }
 0x7b2   :  { %4166 = vrcp.f32 %v1980_v38 }
 0x7b4   :  { %v1989_v13 = vpop.xlane.xlu1 %1988 }
 0x7b5   :  { %4168 = vrcp.f32 %v1989_v13  ;;  %v1986_v46 = vpop.xlane.xlu0 %1985 }
 0x7b6   :  { %v4161_v40 = vpop.eup %4160  ;;  %4170 = vrcp.f32 %v1986_v46 }
 0x7b7   :  { %v1997_v43 = vmul.f32 %v4161_v40, %v4145_v42 }
 0x7b8   :  { %v2539_v19 = vpop.permute.xlu1 %2538 }
 0x7b9   :  { %4011 = vmatmul.mubr.msk.f32.vlgmr.msra.gmra.mxu1 %vm1917_vm4, %v1997_v43  ;;  %v2463_v21 = vpop.permute.xlu0 %2462 }
 0x7ba   :  { %v4163_v47 = vpop.eup %4162  ;;  %4019 = vmatpush3.msra.mxu1 %v2387_v6  ;;  %4020 = vmatprep.mubr.msk.f32.mxu1 %vm4264_vm3, %v4262_v41 }
 0x7bb   :  { %v1995_v53 = vmul.f32 %v4163_v47, %v4147_v48  ;;  %4028 = vmatprep.subr.mxu1 %v4262_v41 }
 0x7bd   :  { %4006 = vmatmul.mubr.msk.f32.vlgmr.msra.gmra.mxu0 %vm1917_vm4, %v1995_v53 }
 0x7be   :  { %v4165_v15 = vpop.eup %4164  ;;  %4014 = vmatpush3.msra.mxu0 %v2311_v7  ;;  %4015 = vmatprep.mubr.msk.f32.mxu0 %vm4264_vm3, %v4262_v41 }
 0x7bf   :  { %v4167_v16 = vpop.eup %4166  ;;  %4023 = vmatprep.subr.mxu0 %v4262_v41  ;;  %v2001_v17 = vmul.f32 %v4165_v15, %v4149_v50 }
 0x7c0   :  { %v1999_v18 = vmul.f32 %v4167_v16, %v4151_v51 }
 0x7c1   :  { %4021 = vmatmul.mubr.msk.f32.vlgmr.msra.gmra.mxu1 %vm1917_vm4, %v2001_v17 }
 0x7c2   :  { %v4169_v20 = vpop.eup %4168  ;;  %4016 = vmatmul.mubr.msk.f32.vlgmr.msra.gmra.mxu0 %vm1917_vm4, %v1999_v18  ;;  %4029 = vmatpush3.msra.mxu1 %v2539_v19 }
 0x7c3   :  { %v4171_v23 = vpop.eup %4170  ;;  %4024 = vmatpush3.msra.mxu0 %v2463_v21  ;;  %4025 = vmatprep.mubr.msk.f32.mxu0 %vm4264_vm3, %v4262_v41  ;;  %v2005_v28 = vmul.f32 %v4169_v20, %v4682_v58 }
 0x7c4   :  { %4030 = vmatprep.mubr.msk.f32.mxu1 %vm4264_vm3, %v4262_v41  ;;  %v2003_v30 = vmul.f32 %v4171_v23, %v4684_v59  ;;  %4033 = vmatprep.subr.mxu0 %v2646_v37 }
 0x7c5   :  { %4031 = vmatmul.mubr.msk.f32.vlgmr.msra.gmra.mxu1 %vm1917_vm4, %v2005_v28  ;;  %v2773_v28 = vld [vmem:[%s4963_s7 + $0x8] sm:$0xff] }
 0x7c6   :  { %4026 = vmatmul.mubr.msk.f32.vlgmr.msra.gmra.mxu0 %vm1917_vm4, %v2003_v30  ;;  %4040 = vmatprep.subr.mxu1 %v2773_v28  ;;  %v2772_v30 = vld [vmem:[%s4963_s7] sm:$0xff] }
 0x7c7   :  { %4034 = vmatpush3.msra.mxu0 %v2646_v37  ;;  %4041 = vmatpush3.msra.mxu1 %v2773_v28 }
 0x7c8   :  { %4035 = vmatprep.subr.mxu0 %v2645_v33  ;;  %4042 = vmatprep.subr.mxu1 %v2772_v30 }
 0x7c9   :  { %4036 = vmatpush3.msra.mxu0 %v2645_v33  ;;  %4043 = vmatpush3.msra.mxu1 %v2772_v30  ;;  %v4762_v33 = vsub.s32 7, %v4374_v24 }
 0x82f   :  { %v2154_v31 = vpop.f32.mrf.mxu1 }
 0x830   :  { %v2078_v32 = vpop.f32.mrf.mxu0 }
 0x831   :  { %v4002_v35 = vpop.f32.mrf.mxu1 }
 0x832   :  { %v3997_v36 = vpop.f32.mrf.mxu0 }
 0x879   :  { %v2306_v26 = vpop.f32.mrf.mxu1 }
 0x87a   :  { %2618 = vrot.lane.b32.xlu1 %v2306_v26, %s4269_s22 }
 0x87b   :  { %v4012_v34 = vpop.f32.mrf.mxu1 }
 0x87c   :  { %v4767_v34 = vld [vmem:[%s4958_s2 + $0x8] sm:$0xff] }
 0x87d   :  { %v2230_v44 = vpop.f32.mrf.mxu0 }
 0x87e   :  { %2616 = vrot.lane.b32.xlu0 %v2230_v44, %s4269_s22  ;;  %v2763_v44 = vrot.slane %v4196_v52, %v4762_v33 }
 0x87f   :  { %v4007_v42 = vpop.f32.mrf.mxu0 }
 0x881   :  { %v2458_v45 = vpop.f32.mrf.mxu1 }
 0x882   :  { %v2382_v48 = vpop.f32.mrf.mxu0  ;;  %2626 = vrot.lane.b32.xlu1 %v2458_v45, %s4270_s25 }
 0x883   :  { %2624 = vrot.lane.b32.xlu0 %v2382_v48, %s4270_s25  ;;  %v4022_v49 = vpop.f32.mrf.mxu1  ;;  %v2769_v48 = vrot.slane %v4767_v34, %v4377_v25 }
 0x884   :  { %v4017_v50 = vpop.f32.mrf.mxu0 }
 0x885   :  { %v2610_v51 = vpop.f32.mrf.mxu1 }
 0x886   :  { %v2534_v56 = vpop.f32.mrf.mxu0  ;;  %2634 = vrot.lane.b32.xlu1 %v2610_v51, %s4271_s26 }
 0x887   :  { %2632 = vrot.lane.b32.xlu0 %v2534_v56, %s4271_s26  ;;  %v4032_v57 = vpop.f32.mrf.mxu1 }
 0x888   :  { %v4027_v58 = vpop.f32.mrf.mxu0 }
 0x8ec   :  { %v2619_v59 = vpop.permute.xlu1 %2618 }
 0x8ed   :  { %v2639_v5 = vsel %vm198_vm2, %v2154_v31, %v2619_v59  ;;  %v2777_v59 = vrot.slane %v4767_v34, %v4385_v27 }
 0x8f0   :  { %v2617_v61 = vpop.permute.xlu0 %2616 }
 0x8f1   :  { %v2638_v6 = vsel %vm198_vm2, %v2078_v32, %v2617_v61 }
 0x8f4   :  { %v2627_v63 = vpop.permute.xlu1 %2626 }
 0x8f5   :  { %v2625_v3 = vpop.permute.xlu0 %2624  ;;  %v2641_v7 = vsel %vm1917_vm4, %v2639_v5, %v2627_v63 }
 0x8f6   :  { %v2640_v9 = vsel %vm1917_vm4, %v2638_v6, %v2625_v3 }
 0x8f8   :  { %v2635_v8 = vpop.permute.xlu1 %2634 }
 0x8f9   :  { %v2644_v1 = vsel %vm2642_vm5, %v2641_v7, %v2635_v8  ;;  %v2633_v10 = vpop.permute.xlu0 %2632 }
 0x8fa   :  { %v2643_v0 = vsel %vm2642_vm5, %v2640_v9, %v2633_v10 }
 0x8fb   :  { %4037 = vmatprep.mubr.msk.f32.mxu0 %vm59_vm0, %v2643_v0 }
 0x8fc   :  { %4038 = vmatmul.mubr.msk.f32.vlgmr.msra.gmra.mxu0 %vm59_vm0, %v2644_v1 }
 0x9bc   :  { %v4039_v12 = vpop.f32.mrf.mxu0 }
 0x9bd   :  { %v2729_v38 = vadd.f32 %v4039_v12, %v2650_v60 }
 0x9be   :  { %v2723_v13 = vpop.f32.mrf.mxu0 }
 0x9bf   :  { %v4742_v46 = vadd.f32 %v2729_v38, %v4411_v62  ;;  %v2724_v40 = vadd.f32 %v2723_v13, %v2650_v60  ;;  %v2939_v60 = vld [vmem:[%s4964_s8] sm:$0xf]  ;;  %v2892_v13 = vrot.slane %v4767_v34, %v4399_v39 }
 0x9c0   :  { %4047 = vmatprep.subr.msk.mxu0 %vm205_vm1, %v2939_v60 }
 0x9c1   :  { %v4745_v43 = vadd.f32 %v2724_v40, %v4414_v2  ;;  %v2737_v47 = vsel %vm59_vm0, %v4742_v46, 0.0  ;;  %4048 = vmatpush3.msk.msra.mxu0 %vm205_vm1, %v2939_v60  ;;  %v2898_v40 = vrot.slane %v4767_v34, %v4406_v55 }
 0x9c2   :  { %2738 = vadd.xlane.f32.xlu1 %v2737_v47 }
 0x9c3   :  { %v2734_v53 = vsel %vm59_vm0, %v4745_v43, 0.0 }
 0x9c4   :  { %2735 = vadd.xlane.f32.xlu0 %v2734_v53 }
 0xa4b   :  { %v2739_v15 = vpop.xlane.xlu1 %2738 }
 0xa4c   :  { %v2741_v16 = vmul.f32 0.0625, %v2739_v15 }
 0xa4d   :  { %v2736_v17 = vpop.xlane.xlu0 %2735 }
 0xa4e   :  { %v2740_v18 = vmul.f32 0.0625, %v2736_v17  ;;  %v2743_v19 = vsub.f32 %v4742_v46, %v2741_v16  ;;  %v2906_v17 = vrot.slane %v4767_v34, %v4431_v22 }
 0xa50   :  { %v2742_v62 = vsub.f32 %v4745_v43, %v2740_v18  ;;  %v2745_v21 = vmul.f32 %v2743_v19, %v2743_v19 }
 0xa52   :  { %v2744_v20 = vmul.f32 %v2742_v62, %v2742_v62  ;;  %v2749_v23 = vsel %vm59_vm0, %v2745_v21, 0.0 }
 0xa54   :  { %v2746_v2 = vsel %vm59_vm0, %v2744_v20, 0.0 }
 0xa55   :  { %2747 = vadd.xlane.f32.xlu0 %v2746_v2 }
 0xa59   :  { %2750 = vadd.xlane.f32.xlu0 %v2749_v23  ;;  %v2914_v23 = vrot.slane %v4767_v34, %v4436_v29 }
 0xade   :  { %v2748_v31 = vpop.xlane.xlu0 %2747 }
 0xadf   :  { %v2752_v32 = vmul.f32 0.0625, %v2748_v31 }
 0xae1   :  { %v2754_v35 = vadd.f32 1e-05, %v2752_v32 }
 0xae2   :  { %v2751_v36 = vpop.xlane.xlu0 %2750 }
 0xae3   :  { %4172 = vrsqrt.f32 %v2754_v35  ;;  %v2753_v37 = vmul.f32 0.0625, %v2751_v36 }
 0xae5   :  { %v2755_v26 = vadd.f32 1e-05, %v2753_v37  ;;  %v2920_v37 = vrot.slane %v4767_v34, %v4735_v11 }
 0xae7   :  { %4174 = vrsqrt.f32 %v2755_v26 }
 0xaf0   :  { %v4173_v42 = vpop.eup %4172 }
 0xaf1   :  { %v2758_v45 = vmul.f32 %v4173_v42, %v2742_v62 }
 0xaf3   :  { %v2764_v49 = vmul.f32 %v2763_v44, %v2758_v45 }
 0xaf4   :  { %v4175_v50 = vpop.eup %4174 }
 0xaf5   :  { %v2759_v51 = vmul.f32 %v4175_v50, %v2743_v19  ;;  %v2770_v56 = vadd.f32 %v2769_v48, %v2764_v49  ;;  %v2926_v49 = vrot.slane %v4767_v34, %v4762_v33  ;;  %v4810_v34 = vld [vmem:[%s4958_s2 + $0x10] sm:$0xff] }
 0xaf7   :  { %v2765_v57 = vmul.f32 %v2763_v44, %v2759_v51  ;;  %4044 = vmatprep.mubr.msk.f32.mxu1 %vm59_vm0, %v2770_v56 }
 0xaf9   :  { %v2771_v58 = vadd.f32 %v2769_v48, %v2765_v57 }
 0xafb   :  { %4045 = vmatmul.mubr.msk.f32.vlgmr.msra.gmra.mxu1 %vm59_vm0, %v2771_v58 }
 0xbbb   :  { %v4046_v61 = vpop.f32.mrf.mxu1 }
 0xbbc   :  { %v2856_v63 = vadd.f32 %v4046_v61, %v2777_v59 }
 0xbbd   :  { %v2850_v3 = vpop.f32.mrf.mxu1 }
 0xbbe   :  { %v2860_v5 = vmul.f32 0.5, %v2856_v63  ;;  %v2851_v6 = vadd.f32 %v2850_v3, %v2777_v59 }
 0xbc0   :  { %4176 = vtanh.f32 %v2860_v5  ;;  %v2859_v7 = vmul.f32 0.5, %v2851_v6 }
 0xbc2   :  { %4178 = vtanh.f32 %v2859_v7 }
 0xbcd   :  { %v4177_v8 = vpop.eup %4176 }
 0xbce   :  { %v2864_v9 = vadd.f32 1.0, %v4177_v8 }
 0xbcf   :  { %v4179_v1 = vpop.eup %4178 }
 0xbd0   :  { %v2866_v10 = vmul.f32 0.5, %v2864_v9  ;;  %v2863_v0 = vadd.f32 1.0, %v4179_v1  ;;  %v2943_v1 = vrot.slane %v4810_v34, %v4377_v25 }
 0xbd2   :  { %2871 = vrot.lane.b32.xlu1 %v2866_v10, %s4260_s5  ;;  %v2865_v52 = vmul.f32 0.5, %v2863_v0 }
 0xbd4   :  { %2869 = vrot.lane.b32.xlu0 %v2865_v52, %s4260_s5 }
 0xc44   :  { %v2872_v12 = vpop.permute.xlu1 %2871 }
 0xc45   :  { %v2876_v38 = vmul.f32 %v2872_v12, %v2856_v63 }
 0xc46   :  { %v2870_v47 = vpop.permute.xlu0 %2869 }
 0xc47   :  { %v2881_v53 = vrot.slane %v2876_v38, 7  ;;  %v2886_v15 = vrot.slane %v2876_v38, 1  ;;  %v2875_v16 = vmul.f32 %v2870_v47, %v2851_v6  ;;  %v2900_v21 = vmul.f32 %v2898_v40, %v2876_v38 }
 0xc49   :  { %v2883_v18 = vsel %vm2879_vm6, 0.0, %v2881_v53  ;;  %v2888_v19 = vsel %vm2884_vm7, 0.0, %v2886_v15  ;;  %v2880_v62 = vrot.slane %v2875_v16, 7  ;;  %v2885_v20 = vrot.slane %v2875_v16, 1 }
 0xc4a   :  { %v2894_v2 = vmul.f32 %v2892_v13, %v2883_v18  ;;  %v2908_v32 = vmul.f32 %v2906_v17, %v2888_v19  ;;  %v2899_v36 = vmul.f32 %v2898_v40, %v2875_v16 }
 0xc4b   :  { %v2882_v28 = vsel %vm2879_vm6, 0.0, %v2880_v62  ;;  %v2887_v30 = vsel %vm2884_vm7, 0.0, %v2885_v20  ;;  %v3799_v20 = vld [vmem:[%s4959_s3 + $0x18] sm:$0xff] }
 0xc4c   :  { %v2902_v31 = vadd.f32 %v2900_v21, %v2894_v2  ;;  %v2893_v35 = vmul.f32 %v2892_v13, %v2882_v28  ;;  %v2907_v42 = vmul.f32 %v2906_v17, %v2887_v30  ;;  %v3798_v2 = vld [vmem:[%s4959_s3 + $0x10] sm:$0xff]  ;;  %4052 = vmatprep.subr.mxu1 %v3799_v20 }
 0xc4d   :  { %4053 = vmatpush3.msra.mxu1 %v3799_v20 }
 0xc4e   :  { %v2910_v26 = vadd.f32 %v2908_v32, %v2902_v31  ;;  %v2901_v44 = vadd.f32 %v2899_v36, %v2893_v35  ;;  %4054 = vmatprep.subr.mxu1 %v3798_v2  ;;  %v3064_v36 = vrot.slane %v4810_v34, %v4385_v27 }
 0xc4f   :  { %4055 = vmatpush3.msra.mxu1 %v3798_v2 }
 0xc50   :  { %v2916_v45 = vadd.f32 %v2914_v23, %v2910_v26  ;;  %v2909_v48 = vadd.f32 %v2907_v42, %v2901_v44 }
 0xc52   :  { %v2922_v50 = vmul.f32 %v2920_v37, %v2916_v45  ;;  %v2915_v51 = vadd.f32 %v2914_v23, %v2909_v48  ;;  %v3070_v45 = vrot.slane %v4810_v34, %v4399_v39 }
 0xc54   :  { %v2921_v56 = vmul.f32 %v2920_v37, %v2915_v51  ;;  %v2928_v24 = vadd.f32 %v2926_v49, %v2922_v50  ;;  %v3800_v51 = vld [vmem:[%s4960_s4 + $0x4] sm:$0xf] }
 0xc55   :  { %4059 = vmatprep.subr.msk.mxu0 %vm205_vm1, %v3800_v51 }
 0xc56   :  { %v2927_v57 = vadd.f32 %v2926_v49, %v2921_v56  ;;  %v2930_v58 = vmul.f32 0.5, %v2928_v24  ;;  %v3076_v56 = vrot.slane %v4810_v34, %v4406_v55 }
 0xc58   :  { %v2929_v59 = vmul.f32 0.5, %v2927_v57  ;;  %4180 = vtanh.f32 %v2930_v58 }
 0xc5a   :  { %4182 = vtanh.f32 %v2929_v59 }
 0xc65   :  { %v4181_v61 = vpop.eup %4180 }
 0xc66   :  { %v2934_v63 = vadd.f32 1.0, %v4181_v61 }
 0xc67   :  { %v4183_v3 = vpop.eup %4182 }
 0xc68   :  { %v2933_v5 = vadd.f32 1.0, %v4183_v3  ;;  %v2936_v6 = vmul.f32 0.5, %v2934_v63 }
 0xc6a   :  { %v2935_v7 = vmul.f32 0.5, %v2933_v5  ;;  %v2938_v9 = vmul.f32 %v2936_v6, %v2928_v24 }
 0xc6c   :  { %v2937_v8 = vmul.f32 %v2935_v7, %v2927_v57 }
 0xc6e   :  { %4049 = vmatprep.mubr.msk.f32.mxu0 %vm198_vm2, %v2937_v8 }
 0xc6f   :  { %4050 = vmatmul.mubr.msk.f32.vlgmr.msra.gmra.mxu0 %vm198_vm2, %v2938_v9 }
 0xc70   :  { %4060 = vmatpush3.msk.msra.mxu0 %vm205_vm1, %v3800_v51 }
 0xd2f   :  { %v4051_v10 = vpop.f32.mrf.mxu0 }
 0xd30   :  { %v3025_v0 = vadd.f32 %v4051_v10, %v2943_v1 }
 0xd31   :  { %v3019_v52 = vpop.f32.mrf.mxu0 }
 0xd32   :  { %v4815_v60 = vadd.f32 %v3025_v0, %v4742_v46  ;;  %v3020_v12 = vadd.f32 %v3019_v52, %v2943_v1  ;;  %v3171_v0 = vrot.slane %v4810_v34, %v4431_v22 }
 0xd34   :  { %v4818_v38 = vadd.f32 %v3020_v12, %v4745_v43  ;;  %v3038_v13 = vsel %vm59_vm0, %v4815_v60, 0.0 }
 0xd35   :  { %3039 = vadd.xlane.f32.xlu0 %v3038_v13 }
 0xd36   :  { %v3035_v40 = vsel %vm59_vm0, %v4818_v38, 0.0 }
 0xd37   :  { %3036 = vadd.xlane.f32.xlu1 %v3035_v40 }
 0xdbe   :  { %v3040_v47 = vpop.xlane.xlu0 %3039 }
 0xdbf   :  { %v3042_v53 = vmul.f32 0.0625, %v3040_v47 }
 0xdc0   :  { %v3037_v15 = vpop.xlane.xlu1 %3036 }
 0xdc1   :  { %v3044_v16 = vsub.f32 %v4815_v60, %v3042_v53  ;;  %v3041_v17 = vmul.f32 0.0625, %v3037_v15 }
 0xdc3   :  { %v3043_v46 = vsub.f32 %v4818_v38, %v3041_v17  ;;  %v3046_v18 = vmul.f32 %v3044_v16, %v3044_v16 }
 0xdc5   :  { %v3050_v43 = vsel %vm59_vm0, %v3046_v18, 0.0  ;;  %v3045_v19 = vmul.f32 %v3043_v46, %v3043_v46 }
 0xdc6   :  { %3051 = vadd.xlane.f32.xlu1 %v3050_v43 }
 0xdc7   :  { %v3047_v62 = vsel %vm59_vm0, %v3045_v19, 0.0 }
 0xdc8   :  { %3048 = vadd.xlane.f32.xlu0 %v3047_v62 }
 0xe4f   :  { %v3052_v21 = vpop.xlane.xlu1 %3051 }
 0xe50   :  { %v3054_v23 = vmul.f32 0.0625, %v3052_v21 }
 0xe51   :  { %v3049_v28 = vpop.xlane.xlu0 %3048 }
 0xe52   :  { %v3056_v30 = vadd.f32 1e-05, %v3054_v23  ;;  %v3053_v31 = vmul.f32 0.0625, %v3049_v28  ;;  %v3364_v28 = vld [vmem:[%s4965_s9] sm:$0xff] }
 0xe54   :  { %4184 = vrsqrt.f32 %v3056_v30  ;;  %v3055_v32 = vadd.f32 1e-05, %v3053_v31 }
 0xe56   :  { %4186 = vrsqrt.f32 %v3055_v32 }
 0xe61   :  { %v4185_v35 = vpop.eup %4184 }
 0xe62   :  { %v3060_v37 = vmul.f32 %v4185_v35, %v3044_v16 }
 0xe63   :  { %v4187_v26 = vpop.eup %4186 }
 0xe64   :  { %v3059_v44 = vmul.f32 %v4187_v26, %v3043_v46  ;;  %v3066_v42 = vmul.f32 %v3064_v36, %v3060_v37  ;;  %v3289_v26 = vrot.slane %v4810_v34, %v4436_v29 }
 0xe66   :  { %v3065_v48 = vmul.f32 %v3064_v36, %v3059_v44  ;;  %v3072_v50 = vadd.f32 %v3070_v45, %v3066_v42  ;;  %v3295_v42 = vrot.slane %v4810_v34, %v4735_v11 }
 0xe68   :  { %v3071_v49 = vadd.f32 %v3070_v45, %v3065_v48 }
 0xe6a   :  { %4056 = vmatprep.mubr.msk.f32.mxu1 %vm59_vm0, %v3071_v49 }
 0xe6b   :  { %4057 = vmatmul.mubr.msk.f32.vlgmr.msra.gmra.mxu1 %vm59_vm0, %v3072_v50 }
 0xf2b   :  { %v4058_v24 = vpop.f32.mrf.mxu1 }
 0xf2c   :  { %v3155_v57 = vadd.f32 %v4058_v24, %v3076_v56 }
 0xf2d   :  { %v3149_v58 = vpop.f32.mrf.mxu1 }
 0xf2e   :  { %v3159_v59 = vmul.f32 0.5, %v3155_v57  ;;  %v3150_v61 = vadd.f32 %v3149_v58, %v3076_v56 }
 0xf30   :  { %4188 = vtanh.f32 %v3159_v59  ;;  %v3158_v63 = vmul.f32 0.5, %v3150_v61 }
 0xf32   :  { %4190 = vtanh.f32 %v3158_v63 }
 0xf3d   :  { %v4189_v3 = vpop.eup %4188 }
 0xf3e   :  { %v3163_v5 = vadd.f32 1.0, %v4189_v3 }
 0xf3f   :  { %v4191_v6 = vpop.eup %4190 }
 0xf40   :  { %v3162_v7 = vadd.f32 1.0, %v4191_v6  ;;  %v3165_v8 = vmul.f32 0.5, %v3163_v5 }
 0xf42   :  { %v3164_v9 = vmul.f32 0.5, %v3162_v7  ;;  %v3167_v10 = vmul.f32 %v3165_v8, %v3155_v57 }
 0xf44   :  { %v3166_v1 = vmul.f32 %v3164_v9, %v3150_v61 }
 0xf46   :  { %4061 = vmatprep.mubr.msk.f32.mxu0 %vm198_vm2, %v3166_v1 }
 0xf47   :  { %4062 = vmatmul.mubr.msk.f32.vlgmr.msra.gmra.mxu0 %vm198_vm2, %v3167_v10 }
0x1007   :  { %v4063_v52 = vpop.f32.mrf.mxu0 }
0x1008   :  { %v3253_v12 = vadd.f32 %v4063_v52, %v3171_v0 }
0x1009   :  { %v3247_v13 = vpop.f32.mrf.mxu0 }
0x100a   :  { %v3257_v40 = vmul.f32 0.5, %v3253_v12  ;;  %v3248_v47 = vadd.f32 %v3247_v13, %v3171_v0 }
0x100c   :  { %v3256_v53 = vmul.f32 0.5, %v3248_v47  ;;  %v3259_v15 = vadd.f32 %v3257_v40, %v4815_v60 }
0x100e   :  { %v3263_v16 = vsel %vm59_vm0, %v3259_v15, 0.0  ;;  %v3258_v17 = vadd.f32 %v3256_v53, %v4818_v38  ;;  %v3365_v38 = vld [vmem:[%s4965_s9 + $0x8] sm:$0xff] }
0x100f   :  { %3264 = vadd.xlane.f32.xlu1 %v3263_v16  ;;  %4064 = vmatprep.subr.mxu1 %v3365_v38 }
0x1010   :  { %v3260_v46 = vsel %vm59_vm0, %v3258_v17, 0.0  ;;  %4065 = vmatpush3.msra.mxu1 %v3365_v38 }
0x1011   :  { %3261 = vadd.xlane.f32.xlu0 %v3260_v46  ;;  %4066 = vmatprep.subr.mxu1 %v3364_v28 }
0x1012   :  { %4067 = vmatpush3.msra.mxu1 %v3364_v28 }
0x1098   :  { %v3265_v18 = vpop.xlane.xlu1 %3264 }
0x1099   :  { %v3267_v43 = vmul.f32 0.0625, %v3265_v18 }
0x109a   :  { %v3262_v19 = vpop.xlane.xlu0 %3261 }
0x109b   :  { %v3269_v22 = vsub.f32 %v3259_v15, %v3267_v43  ;;  %v3266_v62 = vmul.f32 0.0625, %v3262_v19  ;;  %v4890_v43 = vld [vmem:[%s4966_s10] sm:$0xf]  ;;  %v3369_v19 = vrot.slane %v4810_v34, %v4762_v33  ;;  %s4912_s10 = smov 0  }
0x109d   :  { %v3268_v20 = vsub.f32 %v3258_v17, %v3266_v62  ;;  %v3271_v2 = vmul.f32 %v3269_v22, %v3269_v22 }
0x109f   :  { %v3275_v21 = vsel %vm59_vm0, %v3271_v2, 0.0  ;;  %v3270_v23 = vmul.f32 %v3268_v20, %v3268_v20 }
0x10a0   :  { %3276 = vadd.xlane.f32.xlu1 %v3275_v21 }
0x10a1   :  { %v3272_v60 = vsel %vm59_vm0, %v3270_v23, 0.0 }
0x10a2   :  { %3273 = vadd.xlane.f32.xlu0 %v3272_v60 }
0x1129   :  { %v3277_v30 = vpop.xlane.xlu1 %3276 }
0x112a   :  { %v3279_v31 = vmul.f32 0.0625, %v3277_v30 }
0x112b   :  { %v3274_v32 = vpop.xlane.xlu0 %3273 }
0x112c   :  { %v3281_v35 = vadd.f32 1e-05, %v3279_v31  ;;  %v3278_v36 = vmul.f32 0.0625, %v3274_v32 }
0x112e   :  { %4192 = vrsqrt.f32 %v3281_v35  ;;  %v3280_v37 = vadd.f32 1e-05, %v3278_v36  ;;  %v4906_v35 = vmov 0.0   ;;  %v4908_v36 = vmov 0.0  }
0x1130   :  { %4194 = vrsqrt.f32 %v3280_v37  ;;  %v4910_v37 = vmov 0.0  }
0x113b   :  { %v4193_v44 = vpop.eup %4192 }
0x113c   :  { %v3285_v45 = vmul.f32 %v4193_v44, %v3269_v22 }
0x113d   :  { %v4195_v48 = vpop.eup %4194 }
0x113e   :  { %v3291_v49 = vmul.f32 %v3289_v26, %v3285_v45  ;;  %v3284_v50 = vmul.f32 %v4195_v48, %v3268_v20 }
0x1140   :  { %v3297_v51 = vadd.f32 %v3295_v42, %v3291_v49  ;;  %v3290_v56 = vmul.f32 %v3289_v26, %v3284_v50 }
0x1142   :  { %v3313_v24 = vcombine.high %v3297_v51, %v4262_v41  ;;  %v3296_v57 = vadd.f32 %v3295_v42, %v3290_v56  ;;  %v3320_v61 = vrot.slane %v3297_v51, %v4490_v54 }
0x1144   :  { %v3298_v58 = vcombine.high %v3296_v57, %v4262_v41  ;;  %v3305_v59 = vrot.slane %v3296_v57, %v4490_v54  ;;  %v3327_v11 = vrot.slane %v3313_v24, %v4490_v54 }
0x1146   :  { %v3328_v29 = vcombine.low %v3305_v59, %v3320_v61  ;;  %v3329_v63 = vcombine.high %v3305_v59, %v3320_v61  ;;  %v3312_v3 = vrot.slane %v3298_v58, %v4490_v54 }
0x1148   :  { %v3336_v5 = vrot.slane %v3328_v29, %v4508_v4  ;;  %v3343_v6 = vrot.slane %v3329_v63, %v4508_v4  ;;  %v3344_v7 = vcombine.low %v3312_v3, %v3327_v11  ;;  %v3345_v8 = vcombine.high %v3312_v3, %v3327_v11 }
0x114a   :  { %v3360_v9 = vcombine.high %v3336_v5, %v4262_v41  ;;  %v3361_v1 = vcombine.high %v3343_v6, %v4262_v41  ;;  %v3352_v10 = vrot.slane %v3344_v7, %v4508_v4  ;;  %v3359_v0 = vrot.slane %v3345_v8, %v4508_v4 }
0x114c   :  { %v3378_v52 = vcombine.low %v3336_v5, %v3360_v9  ;;  %v3379_v12 = vcombine.low %v3343_v6, %v3361_v1  ;;  %v3362_v13 = vcombine.high %v3352_v10, %v4262_v41  ;;  %v3363_v40 = vcombine.high %v3359_v0, %v4262_v41 }
0x114e   :  { %v3386_v47 = vrot.slane %v3378_v52, %v4490_v54  ;;  %v3393_v53 = vrot.slane %v3379_v12, %v4490_v54  ;;  %v3395_v15 = vcombine.low %v3352_v10, %v3362_v13  ;;  %v3396_v16 = vcombine.low %v3359_v0, %v3363_v40 }
0x1150   :  { %v3394_v17 = vcombine.low %v3386_v47, %v3393_v53  ;;  %v3403_v46 = vrot.slane %v3395_v15, %v4490_v54  ;;  %v3410_v18 = vrot.slane %v3396_v16, %v4490_v54 }
0x1152   :  { %4068 = vmatprep.mubr.msk.f32.mxu1 %vm59_vm0, %v3394_v17  ;;  %v3411_v4 = vcombine.low %v3403_v46, %v3410_v18 }
0x1154   :  { %4069 = vmatmul.mubr.msk.f32.vlgmr.msra.gmra.mxu1 %vm59_vm0, %v3411_v4 }
0x1214   :  { %v4070_v22 = vpop.f32.mrf.mxu1 }
0x1215   :  { %v3488_v62 = vadd.f32 %v4070_v22, %v3369_v19 }
0x1216   :  { %v3482_v20 = vpop.f32.mrf.mxu1 }
0x1217   :  { %v3510_v2 = vcombine.high %v3488_v62, %v3488_v62  ;;  %v3517_v21 = vrot.slane %v3488_v62, %v4490_v54  ;;  %v3483_v23 = vadd.f32 %v3482_v20, %v3369_v19 }
0x1219   :  { %v3524_v60 = vrot.slane %v3510_v2, %v4490_v54  ;;  %v3525_v38 = vcombine.high %v3517_v21, %v3517_v21  ;;  %3540 = vst.msk [vmem:[#allocation2 + $0x8] sm:$0x3] %vm3535_vm8, %v3517_v21  ;;  %v3493_v28 = vcombine.high %v3483_v23, %v3483_v23  ;;  %v3500_v30 = vrot.slane %v3483_v23, %v4490_v54 }
0x121b   :  { %v3526_v31 = vcombine.high %v3524_v60, %v3524_v60  ;;  %3541 = vst.msk [vmem:[#allocation2 + $0xa] sm:$0x3] %vm3535_vm8, %v3525_v38  ;;  %3542 = vst.msk [vmem:[#allocation2 + $0xc] sm:$0x3] %vm3535_vm8, %v3524_v60  ;;  %v3507_v33 = vrot.slane %v3493_v28, %v4490_v54  ;;  %v3508_v34 = vcombine.high %v3500_v30, %v3500_v30 }
0x121c   :  { %3536 = vst.msk [vmem:[#allocation2] sm:$0x3] %vm3535_vm8, %v3500_v30 }
0x121d   :  { %3543 = vst.msk [vmem:[#allocation2 + $0xe] sm:$0x3] %vm3535_vm8, %v3526_v31  ;;  %v3509_v32 = vcombine.high %v3507_v33, %v3507_v33  ;;  %3537 = vst.msk [vmem:[#allocation2 + $0x2] sm:$0x3] %vm3535_vm8, %v3508_v34 }
0x121e   :  { %3538 = vst.msk [vmem:[#allocation2 + $0x4] sm:$0x3] %vm3535_vm8, %v3507_v33 }
0x121f   :  { %3539 = vst.msk [vmem:[#allocation2 + $0x6] sm:$0x3] %vm3535_vm8, %v3509_v32 }
0x1220 LB: > { %v4272_v54 = vmov 12   ;;  %v4273_v26 = vmov 14   ;;  %v4274_v44 = vmov 13   ;;  %v4275_v42 = vmov 15   ;;  %s3808_s24 = sshll.u32 %s4258_s10, 1  ;;  %s4276_s26 = smov 120   ;;  %s4258_s10 = sphi %s4912_s10, %s3550_s10   ;;  %v4254_v37 = vphi %v4910_v37, %v3626_v37   ;;  %v4250_v36 = vphi %v4908_v36, %v3620_v36   ;;  %v4246_v35 = vphi %v4906_v35, %v4969_v35  }
0x1221   : > { %4197 = vset.pattern.permute.xlu0 %v4272_v54  ;;  %4199 = vset.pattern.permute.xlu1 %v4273_v26  ;;  %v3562_v49 = vrot.slane %v4890_v43, %v4377_v25  ;;  %v3571_v50 = vrot.slane %v4890_v43, %v4385_v27  ;;  %v3581_v51 = vrot.slane %v4890_v43, %v4399_v39  ;;  %s3595_s25 = scalar_lea.vmem [#allocation2], %s3808_s24  ;;  %s4277_s6 = smov 4  }
0x1222   : > { %3556 = vperm.xlu0 %4197, %v4254_v37   ;;  %3575 = vperm.xlu1 %4199, %v4254_v37   ;;  %v3591_v56 = vrot.slane %v4890_v43, %v4406_v55  ;;  %v3601_v5 = vrot.slane %v4366_v14, %v4377_v25  ;;  %v3608_v9 = vrot.slane %v4366_v14, %v4385_v27  ;;  %s4278_s27 = smov 8   ;;  %s3550_s10 = sadd.s32 1, %s4258_s10  }
0x1223   : > { %p3547_p0 = scmp.ge.s32.totalorder %s3550_s10, 8  }
0x1224   :  { %4071 = vmatprep.subr.mxu0 (%p3547_p0), %v4262_v41  ;;  %v3629_v17 = vld [vmem:[%s4967_s11] sm:$0xf] (%p3547_p0)  ;;  %4073 = vmatprep.mubr.msk.f32.mxu0 (%p3547_p0), %vm4264_vm3, %v4262_v41  ;;  %v3633_v18 = vrot.slane (%p3547_p0), %v4366_v14, %v4399_v39  ;;  %s4279_s30 = smov (%p3547_p0), [#allocation3]   ;;  %vm3712_vm9 = vcmask (%p3547_p0), 9216  }
0x1225   :  { %4072 = vmatpush3.msk.msra.mxu0 (%p3547_p0), %vm205_vm1, %v3629_v17  ;;  %s3720_s13 = sshll.u32 (%p3547_p0), %s4279_s30, 4  ;;  %s3721_s13 = int_to_ptr.vmem [resolvable:$true] %s3720_s13 }
0x1226   : > { %4198 = vset.pattern.permute.xlu0 %v4274_v44  ;;  %4200 = vset.pattern.permute.xlu1 %v4275_v42  ;;  %v3596_v11 = vld [vmem:[%s3595_s25] sm:$0x3]  ;;  %s4206_s11 = scalar_lea.vmem (%p3547_p0), %s3721_s13, 32  ;;  %p4211_p2 = scmp.lt.s32.totalorder (%p3547_p0), %s3721_s13, %s3721_s13 }
0x1227   : > { %3565 = vperm.xlu0 %4198, %v4254_v37   ;;  %3585 = vperm.xlu1 %4200, %v4254_v37   ;;  %p4207_p1 = scmp.ne.s32.totalorder (%p3547_p0), %s3721_s13, %s4206_s11  ;;  %p4212_p3 = scmp.lt.s32.totalorder (%p3547_p0), %s4206_s11, %s4206_s11 }
0x1229   :  { %p4213_p4 = por (%p3547_p0), %p4212_p3, %p4211_p2 }
0x122b   : > { %4201 = vset.pattern.permute.xlu0 %v4275_v42  ;;  %p4214_p5 = pnand (%p3547_p0), %p4213_p4, %p4207_p1 }
0x129d   : > { %v3557_v45 = vpop.permute.xlu0 %3556  ;;  %v3576_v48 = vpop.permute.xlu1 %3575 }
0x129e   : > { %v3563_v58 = vmul.f32 %v3562_v49, %v3557_v45  ;;  %v3582_v61 = vmul.f32 %v3581_v51, %v3576_v48 }
0x12a2   : > { %v3566_v24 = vpop.permute.xlu0 %3565  ;;  %v3586_v57 = vpop.permute.xlu1 %3585 }
0x12a3   : > { %v3572_v59 = vmul.f32 %v3571_v50, %v3566_v24  ;;  %v3592_v63 = vmul.f32 %v3591_v56, %v3586_v57 }
0x12a5   : > { %v3573_v29 = vadd.f32 %v3572_v59, %v3563_v58 }
0x12a7   : > { %v3583_v3 = vadd.f32 %v3582_v61, %v3573_v29 }
0x12a9   : > { %v3593_v6 = vadd.f32 %v3592_v63, %v3583_v3 }
0x12ab   : > { %v3597_v7 = vadd.f32 %v3596_v11, %v3593_v6 }
0x12ad   : > { %v3602_v8 = vmul.f32 %v3601_v5, %v3597_v7 }
0x12af   : > { %4202 = vtanh.f32 %v3602_v8 }
0x12bc   : > { %v4203_v1 = vpop.eup %4202 }
0x12bd   : > { %v3604_v10 = vmul.f32 %v4203_v1, %v3601_v5 }
0x12bf   : > { %v3609_v0 = vadd.f32 %v3608_v9, %v3604_v10 }
0x12c1   : > { %3612 = vrot.lane.b32.xlu1 %v3609_v0, %s4276_s26  ;;  %v3610_v13 = vmul.f32 %v4250_v36, %v3609_v0 }
0x1333   : > { %v3613_v52 = vpop.permute.xlu1 %3612 }
0x1334   : > { %v3615_v12 = vmul.f32 %v3613_v52, %v3609_v0 }
0x1336   : > { %3617 = vrot.lane.b32.xlu0 %v3615_v12, %s4277_s6 }
0x13a8   : > { %v3618_v40 = vpop.permute.xlu0 %3617 }
0x13a9   : > { %v3620_v36 = vadd.f32 %v3618_v40, %v3610_v13  }
0x13ab   : > { %4204 = vtanh.f32 %v3620_v36 }
0x13b8   : > { %v4205_v47 = vpop.eup %4204 }
0x13b9   : > { %3623 = vrot.lane.b32.xlu1 %v4205_v47, %s4278_s27 }
0x142b   : > { %v3624_v53 = vpop.permute.xlu1 %3623 }
0x142c   : > { %v3626_v37 = vmul.f32 %v3624_v53, %v3609_v0   ;;  %3549 = sbr.rel (!%p3547_p0) target bundleno = 4640 (0x1220), region = 78 }
0x142e   : > { %v3627_v15 = vadd.f32 %v4246_v35, %v3626_v37  }
0x1430   : > { %v4969_v35 = vmov %v3627_v15  ;;  %v3628_v16 = vmul.f32 (%p3547_p0), 0.125, %v3627_v15 }
0x1432   :  { %3635 = vrot.lane.b32.xlu0 %v3628_v16, %s4263_s0 }
0x14a4   :  { %v3636_v46 = vpop.permute.xlu0 %3635 }
0x14a5   :  { %4074 = vmatmul.mubr.msk.f32.vlgmr.msra.gmra.mxu0 %vm198_vm2, %v3636_v46 }
0x1565   :  { %v3708_v25 = vpop.f32.mrf.mxu0 }
0x1566   :  { %v3709_v27 = vadd.f32 %v3708_v25, %v3633_v18 }
0x1567   :  { %v4075_v55 = vpop.f32.mrf.mxu0 }
0x1568   :  { %3713 = vst.msk [vmem:[#allocation3] sm:$0x3] %vm3712_vm9, %v3709_v27 }
0x1569   :  { %4217 = shalt.err (!%p4214_p5)
}
0x156a   :  { %3723 = dma.vmem_to_hbm [thread:$0]  %s3721_s13, 32, %s4968_s12, [#allocation4]  }
0x156b   :  { %4242 = dma.done.wait [#allocation4], 32  }
0x156c   :  { %4243 = vsyncadd [#allocation4], 4294967264 }
0x156d   :  { %3727 = vsyncpa [#allocation4], 1 }

</bundles_post_ra>
